<compile_context>
chip_gen: v5e
topology: v5e:2x2
jax: 0.10.0
libtpu: 0.0.40
codegen_flags: <defaults>
</compile_context>

<pallas_src>
import functools

import numpy as np
import jax
import jax.numpy as jnp
from jax.experimental import pallas as pl
from jax.experimental.pallas import tpu as pltpu


# -----------------------------------------------------------------------------
# Fused Pallas kernel: decoder stand-in -> final_conv -> bilinear -> activation
# -----------------------------------------------------------------------------
def unet_fused_kernel(x_ref, wdec_ref, bdec_ref, w1_ref, b1_ref, w2_ref, b2_ref,
                      uh_ref, uwT_ref, logits_ref, probs_ref,
                      xpad_scr, fpad_scr, *, num_classes):
    """Whole post-backbone pipeline for one batch element, fully VMEM-resident.

    x_ref    : (1, Hs, Ws, Cin)  f32   decoder-input stand-in feature map
    wdec_ref : (3, 3, Cin, Cmid) bf16  decoder stand-in 3x3 conv
    bdec_ref : (1, Cmid)         f32
    w1_ref   : (9*Cmid, Cmid)    bf16  head 3x3 conv, im2col layout, BN pre-folded
    b1_ref   : (1, Cmid)         f32   conv bias with BN (eval) folded in
    w2_ref   : (Cout, Cmid)      f32   1x1 class projection
    b2_ref   : (Cout,)           f32   SMEM scalars
    uh_ref   : (Hout, Hs) f32, uwT_ref: (Ws, Wout) f32  separable bilinear matrices
    logits/probs : (1, Cout, Hout, Wout) f32  (NCHW, W lane-dense)
    xpad_scr : (Hs+2, Ws+2, Cin)  f32 VMEM scratch (decoder-conv halo)
    fpad_scr : (Hs+2, Ws+2, Cmid) f32 VMEM scratch (head-conv halo)
    """
    _, Cout, Hout, Wout = logits_ref.shape
    _, Hs, Ws, Cin = x_ref.shape
    Cmid = b1_ref.shape[-1]

    # --- decoder stand-in: 3x3 conv + bias + ReLU (halo built in VMEM) --------
    xpad_scr[...] = jnp.zeros_like(xpad_scr)
    xpad_scr[1:Hs + 1, 1:Ws + 1, :] = x_ref[0]
    # Cin is tiny (RGB stand-in): per-tap K=Cin matmuls; the real 64-channel head
    # conv below uses a fused-K im2col matmul instead.
    feat = jnp.zeros((Hs * Ws, Cmid), jnp.float32)
    for ky in range(3):
        for kx in range(3):
            patch = xpad_scr[ky:ky + Hs, kx:kx + Ws, :].reshape(Hs * Ws, Cin)
            feat = feat + jnp.dot(patch.astype(jnp.bfloat16),
                                  wdec_ref[ky, kx, :, :],
                                  preferred_element_type=jnp.float32)
    feat = jnp.maximum(feat + bdec_ref[...], 0.0)                   # (Hs*Ws, Cmid)

    # --- head: 3x3 conv (BN folded) + ReLU as ONE im2col MXU matmul (K=9*Cmid) -
    fpad_scr[...] = jnp.zeros_like(fpad_scr)
    fpad_scr[1:Hs + 1, 1:Ws + 1, :] = feat.reshape(Hs, Ws, Cmid)
    cols = [fpad_scr[ky:ky + Hs, kx:kx + Ws, :]
            for ky in range(3) for kx in range(3)]
    patches = jnp.concatenate(cols, axis=-1).reshape(Hs * Ws, 9 * Cmid)
    acc = jnp.dot(patches.astype(jnp.bfloat16), w1_ref[...],
                  preferred_element_type=jnp.float32)
    acc = jnp.maximum(acc + b1_ref[...], 0.0).reshape(Hs, Ws, Cmid)

    uh = uh_ref[...]                    # (Hout, Hs)
    uwT = uwT_ref[...]                  # (Ws, Wout)
    w2 = w2_ref[...]                    # (Cout, Cmid)

    full_logits = []
    for c in range(num_classes):
        # 1x1 conv as VPU multiply + lane reduce -> (Hs, Ws) slab, W lane-dense.
        wc = w2[c:c + 1, :].reshape(1, 1, Cmid)
        slab = jnp.sum(acc * wc, axis=-1) + b2_ref[c]               # (Hs, Ws)
        # separable bilinear upsample (align_corners=False): U_h @ slab @ U_w^T
        rows = jnp.dot(uh, slab, preferred_element_type=jnp.float32)    # (Hout, Ws)
        full = jnp.dot(rows, uwT, preferred_element_type=jnp.float32)   # (Hout, Wout)
        full_logits.append(full)
        logits_ref[0, c, :, :] = full

    if num_classes == 1:
        probs_ref[0, 0, :, :] = jax.nn.sigmoid(full_logits[0])
    else:
        m = full_logits[0]
        for f in full_logits[1:]:
            m = jnp.maximum(m, f)
        exps = [jnp.exp(f - m) for f in full_logits]
        denom = exps[0]
        for e in exps[1:]:
            denom = denom + e
        inv = 1.0 / denom
        for c in range(num_classes):
            probs_ref[0, c, :, :] = exps[c] * inv


# -----------------------------------------------------------------------------
# pallas_call wrapper
# -----------------------------------------------------------------------------
def unet_segmentor_pallas(x_ds_nhwc, params, out_hw):
    N, Hs, Ws, Cin = x_ds_nhwc.shape
    Cmid = params["b1"].shape[-1]
    num_classes = params["num_classes"]
    Cout = num_classes
    Hout, Wout = out_hw

    uh = jnp.asarray(make_upsample_matrix(Hs, Hout))        # (Hout, Hs)
    uwT = jnp.asarray(make_upsample_matrix(Ws, Wout).T)     # (Ws, Wout)

    kernel = functools.partial(unet_fused_kernel, num_classes=num_classes)
    logits, probs = pl.pallas_call(
        kernel,
        out_shape=(
            jax.ShapeDtypeStruct((N, Cout, Hout, Wout), jnp.float32),
            jax.ShapeDtypeStruct((N, Cout, Hout, Wout), jnp.float32),
        ),
        grid=(N,),
        in_specs=[
            pl.BlockSpec((1, Hs, Ws, Cin), lambda n: (n, 0, 0, 0)),   # x (decoder input)
            pl.BlockSpec((3, 3, Cin, Cmid), lambda n: (0, 0, 0, 0)),  # dec_w (bf16)
            pl.BlockSpec((1, Cmid), lambda n: (0, 0)),                # dec_b
            pl.BlockSpec((9 * Cmid, Cmid), lambda n: (0, 0)),         # w1 im2col (bf16, BN-folded)
            pl.BlockSpec((1, Cmid), lambda n: (0, 0)),                # b1 (BN-folded)
            pl.BlockSpec((Cout, Cmid), lambda n: (0, 0)),             # w2
            pl.BlockSpec(memory_space=pltpu.MemorySpace.SMEM),        # b2 scalars
            pl.BlockSpec((Hout, Hs), lambda n: (0, 0)),               # U_h
            pl.BlockSpec((Ws, Wout), lambda n: (0, 0)),               # U_w^T
        ],
        out_specs=(
            pl.BlockSpec((1, Cout, Hout, Wout), lambda n: (n, 0, 0, 0)),
            pl.BlockSpec((1, Cout, Hout, Wout), lambda n: (n, 0, 0, 0)),
        ),
        scratch_shapes=[
            pltpu.VMEM((Hs + 2, Ws + 2, Cin), jnp.float32),
            pltpu.VMEM((Hs + 2, Ws + 2, Cmid), jnp.float32),
        ],
        compiler_params=pltpu.CompilerParams(dimension_semantics=("parallel",)),
    )(x_ds_nhwc, params["dec_w"], params["dec_b"], params["w1"], params["b1"],
      params["w2"], params["b2"], uh, uwT)
    return logits, probs


# -----------------------------------------------------------------------------
# Parameter init & bilinear matrices (glue, plain JAX / numpy)
# -----------------------------------------------------------------------------
def make_upsample_matrix(in_size, out_size):
    """Bilinear interpolation matrix, half-pixel centers (align_corners=False),
    matching torch.nn.functional.interpolate(mode='bilinear')."""
    scale = in_size / out_size
    m = np.zeros((out_size, in_size), dtype=np.float32)
    for o in range(out_size):
        src = max((o + 0.5) * scale - 0.5, 0.0)
        i0 = int(np.floor(src))
        i0 = min(i0, in_size - 1)
        i1 = min(i0 + 1, in_size - 1)
        w = src - i0
        m[o, i0] += 1.0 - w
        m[o, i1] += w
    return m


def init_params(key, in_channels=3, last_channels=64, num_classes=1):
    ks = jax.random.split(key, 6)
    s = 0.1
    # decoder stand-in conv (PyTorch layout (Cout, Cin, kh, kw))
    w_dec = s * jax.random.normal(ks[0], (last_channels, in_channels, 3, 3), jnp.float32)
    b_dec = s * jax.random.normal(ks[1], (last_channels,), jnp.float32)
    # final_conv[0]: Conv2d(last_channels, last_channels, 3, padding=1)
    w1 = s * jax.random.normal(ks[2], (last_channels, last_channels, 3, 3), jnp.float32)
    b1 = s * jax.random.normal(ks[3], (last_channels,), jnp.float32)
    # final_conv[1]: BatchNorm2d(last_channels)  (gamma=1, beta=0, rm=0, rv=1, eval mode)
    gamma = jnp.ones((last_channels,), jnp.float32)
    beta = jnp.zeros((last_channels,), jnp.float32)
    run_mean = jnp.zeros((last_channels,), jnp.float32)
    run_var = jnp.ones((last_channels,), jnp.float32)
    # final_conv[3]: Conv2d(last_channels, num_classes, kernel_size=1)
    w2 = s * jax.random.normal(ks[4], (num_classes, last_channels, 1, 1), jnp.float32)
    b2 = s * jax.random.normal(ks[5], (num_classes,), jnp.float32)

    eps = 1e-5
    bn_scale = gamma / jnp.sqrt(run_var + eps)            # (Cmid,)
    bn_shift = beta - run_mean * bn_scale                 # (Cmid,)

    # Fold BN (eval mode) into the head conv: scale multiplies along Cout.
    w1_hw = jnp.transpose(w1, (2, 3, 1, 0))               # (3, 3, Cmid, Cmid)
    w1_folded = (w1_hw * bn_scale[None, None, None, :]).reshape(
        9 * last_channels, last_channels).astype(jnp.bfloat16)   # im2col, bf16
    b1_folded = (b1 * bn_scale + bn_shift).reshape(1, last_channels)

    dec_w = jnp.transpose(w_dec, (2, 3, 1, 0)).astype(jnp.bfloat16)   # (3,3,Cin,Cmid)

    return {
        "dec_w": dec_w,
        "dec_b": b_dec.reshape(1, last_channels),
        "w1": w1_folded,
        "b1": b1_folded,
        "w2": w2[:, :, 0, 0],          # (num_classes, Cmid), f32 (VPU path)
        "b2": b2,                      # (num_classes,), f32 (SMEM scalars)
        "num_classes": num_classes,
    }


def unet_segmentor_forward(input_x_nchw, additional_info, params):
    """Mirrors UNetSegmentor.forward (use_aux_head=False, cls_emb_dim=0)."""
    del additional_info  # organ_id only consumed when cls_emb_dim > 0
    N, C, H, W = input_x_nchw.shape

    x_nhwc = jnp.transpose(input_x_nchw, (0, 2, 3, 1))

    # --- backbone + UNetDecoder stand-in (see TODO at top of file) ---
    # stride-2 avg-pool to the decoder output resolution; the conv+ReLU that
    # widens to `last_channels` happens inside the fused Pallas kernel.
    x_ds = x_nhwc.reshape(N, H // 2, 2, W // 2, 2, C).mean(axis=(2, 4))

    logits, probs = unet_segmentor_pallas(x_ds, params, (H, W))
    # outputs are already NCHW (N, num_classes, H, W), lane-dense on W.
    return {"logits": logits, "probs": probs}


# -----------------------------------------------------------------------------
if __name__ == "__main__":
    N, C_in, H, W = 2, 3, 16, 16
    key = jax.random.PRNGKey(0)
    k_x, k_p = jax.random.split(key)
    input_x = jax.random.normal(k_x, (N, C_in, H, W), dtype=jnp.float32)
    additional_info = {"organ_id": jnp.zeros((N,), dtype=jnp.int32)}

    params = init_params(k_p, in_channels=C_in, last_channels=64, num_classes=1)

    out = unet_segmentor_forward(input_x, additional_info, params)
    jax.block_until_ready(out["probs"])

    assert out["logits"].shape == (N, 1, H, W)
    assert out["probs"].shape == (N, 1, H, W)
    assert bool(jnp.all(jnp.isfinite(out["logits"])))
    assert bool(jnp.all((out["probs"] >= 0.0) & (out["probs"] <= 1.0)))
    print("KERNEL_OK")
</pallas_src>

<mosaic_0001>
module attributes {stable_mosaic.version = 11 : i64} {
  func.func @unet_fused_kernel(%arg0: i32, %arg1: memref<1x8x8x3xf32, #tpu.memory_space<vmem>>, %arg2: memref<3x3x3x64xbf16, #tpu.memory_space<vmem>>, %arg3: memref<1x64xf32, #tpu.memory_space<vmem>>, %arg4: memref<576x64xbf16, #tpu.memory_space<vmem>>, %arg5: memref<1x64xf32, #tpu.memory_space<vmem>>, %arg6: memref<1x64xf32, #tpu.memory_space<vmem>>, %arg7: memref<1xf32, #tpu.memory_space<smem>>, %arg8: memref<16x8xf32, #tpu.memory_space<vmem>>, %arg9: memref<8x16xf32, #tpu.memory_space<vmem>>, %arg10: memref<1x1x16x16xf32, #tpu.memory_space<vmem>>, %arg11: memref<1x1x16x16xf32, #tpu.memory_space<vmem>>, %arg12: memref<10x10x3xf32, #tpu.memory_space<vmem>>, %arg13: memref<10x10x64xf32, #tpu.memory_space<vmem>>) attributes {dimension_semantics = [#tpu.dimension_semantics<parallel>], iteration_bounds = array<i64: 2>, scalar_prefetch = 0 : i64, scratch_operands = 2 : i64, tpu.core_type = #tpu.core_type<tc>, window_params = [{transform_indices = @transform_0, window_bounds = array<i64: 1, 8, 8, 3>}, {pipeline_mode = #tpu.pipeline_mode<synchronous>, transform_indices = @transform_1, window_bounds = array<i64: 3, 3, 3, 64>}, {pipeline_mode = #tpu.pipeline_mode<synchronous>, transform_indices = @transform_2, window_bounds = array<i64: 1, 64>}, {pipeline_mode = #tpu.pipeline_mode<synchronous>, transform_indices = @transform_3, window_bounds = array<i64: 576, 64>}, {pipeline_mode = #tpu.pipeline_mode<synchronous>, transform_indices = @transform_4, window_bounds = array<i64: 1, 64>}, {pipeline_mode = #tpu.pipeline_mode<synchronous>, transform_indices = @transform_5, window_bounds = array<i64: 1, 64>}, {transform_indices = @transform_6, window_bounds = array<i64: 1>}, {pipeline_mode = #tpu.pipeline_mode<synchronous>, transform_indices = @transform_7, window_bounds = array<i64: 16, 8>}, {pipeline_mode = #tpu.pipeline_mode<synchronous>, transform_indices = @transform_8, window_bounds = array<i64: 8, 16>}, {transform_indices = @transform_9, window_bounds = array<i64: 1, 1, 16, 16>}, {transform_indices = @transform_10, window_bounds = array<i64: 1, 1, 16, 16>}]} {
    %cst = arith.constant 0.000000e+00 : f32
    %0 = vector.broadcast %cst : f32 to vector<10x10x3xf32>
    %c0 = arith.constant 0 : index
    %c0_0 = arith.constant 0 : index
    %c0_1 = arith.constant 0 : index
    %1 = vector.load %arg12[%c0, %c0_0, %c0_1] : memref<10x10x3xf32, #tpu.memory_space<vmem>>, vector<10x10x3xf32>
    tpu.vector_store %arg12[%c0, %c0_0, %c0_1], %0 {strides = array<i32>} : memref<10x10x3xf32, #tpu.memory_space<vmem>>, vector<10x10x3xf32>,
    %c0_2 = arith.constant 0 : index
    %c0_3 = arith.constant 0 : index
    %c0_4 = arith.constant 0 : index
    %c0_5 = arith.constant 0 : index
    %2 = vector.load %arg1[%c0_2, %c0_3, %c0_4, %c0_5] : memref<1x8x8x3xf32, #tpu.memory_space<vmem>>, vector<1x8x8x3xf32>
    %3 = vector.shape_cast %2 : vector<1x8x8x3xf32> to vector<8x8x3xf32>
    %c1 = arith.constant 1 : index
    %c1_6 = arith.constant 1 : index
    %c0_7 = arith.constant 0 : index
    %4 = vector.load %arg12[%c1, %c1_6, %c0_7] : memref<10x10x3xf32, #tpu.memory_space<vmem>>, vector<8x8x3xf32>
    tpu.vector_store %arg12[%c1, %c1_6, %c0_7], %3 {strides = array<i32>} : memref<10x10x3xf32, #tpu.memory_space<vmem>>, vector<8x8x3xf32>,
    %cst_8 = arith.constant 0.000000e+00 : f32
    %5 = vector.broadcast %cst_8 : f32 to vector<64x64xf32>
    %c0_9 = arith.constant 0 : index
    %c0_10 = arith.constant 0 : index
    %c0_11 = arith.constant 0 : index
    %6 = vector.load %arg12[%c0_9, %c0_10, %c0_11] : memref<10x10x3xf32, #tpu.memory_space<vmem>>, vector<8x8x3xf32>
    %7 = vector.shape_cast %6 : vector<8x8x3xf32> to vector<64x3xf32>
    %8 = arith.truncf %7 : vector<64x3xf32> to vector<64x3xbf16>
    %c0_12 = arith.constant 0 : index
    %c0_13 = arith.constant 0 : index
    %c0_14 = arith.constant 0 : index
    %c0_15 = arith.constant 0 : index
    %9 = vector.load %arg2[%c0_12, %c0_13, %c0_14, %c0_15] : memref<3x3x3x64xbf16, #tpu.memory_space<vmem>>, vector<1x1x3x64xbf16>
    %10 = vector.shape_cast %9 : vector<1x1x3x64xbf16> to vector<3x64xbf16>
    %cst_16 = arith.constant dense<0.000000e+00> : vector<64x64xf32>
    %11 = tpu.matmul %8, %10, %cst_16 {dimension_numbers = #tpu.dot_dimension_numbers<[1], [0], [0], [1], [0, 0, 1, 1], [], []>} : vector<64x3xbf16>, vector<3x64xbf16>, vector<64x64xf32> -> vector<64x64xf32>
    %12 = arith.addf %5, %11 : vector<64x64xf32>
    %c0_17 = arith.constant 0 : index
    %c1_18 = arith.constant 1 : index
    %c0_19 = arith.constant 0 : index
    %13 = vector.load %arg12[%c0_17, %c1_18, %c0_19] : memref<10x10x3xf32, #tpu.memory_space<vmem>>, vector<8x8x3xf32>
    %14 = vector.shape_cast %13 : vector<8x8x3xf32> to vector<64x3xf32>
    %15 = arith.truncf %14 : vector<64x3xf32> to vector<64x3xbf16>
    %c0_20 = arith.constant 0 : index
    %c1_21 = arith.constant 1 : index
    %c0_22 = arith.constant 0 : index
    %c0_23 = arith.constant 0 : index
    %16 = vector.load %arg2[%c0_20, %c1_21, %c0_22, %c0_23] : memref<3x3x3x64xbf16, #tpu.memory_space<vmem>>, vector<1x1x3x64xbf16>
    %17 = vector.shape_cast %16 : vector<1x1x3x64xbf16> to vector<3x64xbf16>
    %cst_24 = arith.constant dense<0.000000e+00> : vector<64x64xf32>
    %18 = tpu.matmul %15, %17, %cst_24 {dimension_numbers = #tpu.dot_dimension_numbers<[1], [0], [0], [1], [0, 0, 1, 1], [], []>} : vector<64x3xbf16>, vector<3x64xbf16>, vector<64x64xf32> -> vector<64x64xf32>
    %19 = arith.addf %12, %18 : vector<64x64xf32>
    %c0_25 = arith.constant 0 : index
    %c2 = arith.constant 2 : index
    %c0_26 = arith.constant 0 : index
    %20 = vector.load %arg12[%c0_25, %c2, %c0_26] : memref<10x10x3xf32, #tpu.memory_space<vmem>>, vector<8x8x3xf32>
    %21 = vector.shape_cast %20 : vector<8x8x3xf32> to vector<64x3xf32>
    %22 = arith.truncf %21 : vector<64x3xf32> to vector<64x3xbf16>
    %c0_27 = arith.constant 0 : index
    %c2_28 = arith.constant 2 : index
    %c0_29 = arith.constant 0 : index
    %c0_30 = arith.constant 0 : index
    %23 = vector.load %arg2[%c0_27, %c2_28, %c0_29, %c0_30] : memref<3x3x3x64xbf16, #tpu.memory_space<vmem>>, vector<1x1x3x64xbf16>
    %24 = vector.shape_cast %23 : vector<1x1x3x64xbf16> to vector<3x64xbf16>
    %cst_31 = arith.constant dense<0.000000e+00> : vector<64x64xf32>
    %25 = tpu.matmul %22, %24, %cst_31 {dimension_numbers = #tpu.dot_dimension_numbers<[1], [0], [0], [1], [0, 0, 1, 1], [], []>} : vector<64x3xbf16>, vector<3x64xbf16>, vector<64x64xf32> -> vector<64x64xf32>
    %26 = arith.addf %19, %25 : vector<64x64xf32>
    %c1_32 = arith.constant 1 : index
    %c0_33 = arith.constant 0 : index
    %c0_34 = arith.constant 0 : index
    %27 = vector.load %arg12[%c1_32, %c0_33, %c0_34] : memref<10x10x3xf32, #tpu.memory_space<vmem>>, vector<8x8x3xf32>
    %28 = vector.shape_cast %27 : vector<8x8x3xf32> to vector<64x3xf32>
    %29 = arith.truncf %28 : vector<64x3xf32> to vector<64x3xbf16>
    %c1_35 = arith.constant 1 : index
    %c0_36 = arith.constant 0 : index
    %c0_37 = arith.constant 0 : index
    %c0_38 = arith.constant 0 : index
    %30 = vector.load %arg2[%c1_35, %c0_36, %c0_37, %c0_38] : memref<3x3x3x64xbf16, #tpu.memory_space<vmem>>, vector<1x1x3x64xbf16>
    %31 = vector.shape_cast %30 : vector<1x1x3x64xbf16> to vector<3x64xbf16>
    %cst_39 = arith.constant dense<0.000000e+00> : vector<64x64xf32>
    %32 = tpu.matmul %29, %31, %cst_39 {dimension_numbers = #tpu.dot_dimension_numbers<[1], [0], [0], [1], [0, 0, 1, 1], [], []>} : vector<64x3xbf16>, vector<3x64xbf16>, vector<64x64xf32> -> vector<64x64xf32>
    %33 = arith.addf %26, %32 : vector<64x64xf32>
    %c1_40 = arith.constant 1 : index
    %c1_41 = arith.constant 1 : index
    %c0_42 = arith.constant 0 : index
    %34 = vector.load %arg12[%c1_40, %c1_41, %c0_42] : memref<10x10x3xf32, #tpu.memory_space<vmem>>, vector<8x8x3xf32>
    %35 = vector.shape_cast %34 : vector<8x8x3xf32> to vector<64x3xf32>
    %36 = arith.truncf %35 : vector<64x3xf32> to vector<64x3xbf16>
    %c1_43 = arith.constant 1 : index
    %c1_44 = arith.constant 1 : index
    %c0_45 = arith.constant 0 : index
    %c0_46 = arith.constant 0 : index
    %37 = vector.load %arg2[%c1_43, %c1_44, %c0_45, %c0_46] : memref<3x3x3x64xbf16, #tpu.memory_space<vmem>>, vector<1x1x3x64xbf16>
    %38 = vector.shape_cast %37 : vector<1x1x3x64xbf16> to vector<3x64xbf16>
    %cst_47 = arith.constant dense<0.000000e+00> : vector<64x64xf32>
    %39 = tpu.matmul %36, %38, %cst_47 {dimension_numbers = #tpu.dot_dimension_numbers<[1], [0], [0], [1], [0, 0, 1, 1], [], []>} : vector<64x3xbf16>, vector<3x64xbf16>, vector<64x64xf32> -> vector<64x64xf32>
    %40 = arith.addf %33, %39 : vector<64x64xf32>
    %c1_48 = arith.constant 1 : index
    %c2_49 = arith.constant 2 : index
    %c0_50 = arith.constant 0 : index
    %41 = vector.load %arg12[%c1_48, %c2_49, %c0_50] : memref<10x10x3xf32, #tpu.memory_space<vmem>>, vector<8x8x3xf32>
    %42 = vector.shape_cast %41 : vector<8x8x3xf32> to vector<64x3xf32>
    %43 = arith.truncf %42 : vector<64x3xf32> to vector<64x3xbf16>
    %c1_51 = arith.constant 1 : index
    %c2_52 = arith.constant 2 : index
    %c0_53 = arith.constant 0 : index
    %c0_54 = arith.constant 0 : index
    %44 = vector.load %arg2[%c1_51, %c2_52, %c0_53, %c0_54] : memref<3x3x3x64xbf16, #tpu.memory_space<vmem>>, vector<1x1x3x64xbf16>
    %45 = vector.shape_cast %44 : vector<1x1x3x64xbf16> to vector<3x64xbf16>
    %cst_55 = arith.constant dense<0.000000e+00> : vector<64x64xf32>
    %46 = tpu.matmul %43, %45, %cst_55 {dimension_numbers = #tpu.dot_dimension_numbers<[1], [0], [0], [1], [0, 0, 1, 1], [], []>} : vector<64x3xbf16>, vector<3x64xbf16>, vector<64x64xf32> -> vector<64x64xf32>
    %47 = arith.addf %40, %46 : vector<64x64xf32>
    %c2_56 = arith.constant 2 : index
    %c0_57 = arith.constant 0 : index
    %c0_58 = arith.constant 0 : index
    %48 = vector.load %arg12[%c2_56, %c0_57, %c0_58] : memref<10x10x3xf32, #tpu.memory_space<vmem>>, vector<8x8x3xf32>
    %49 = vector.shape_cast %48 : vector<8x8x3xf32> to vector<64x3xf32>
    %50 = arith.truncf %49 : vector<64x3xf32> to vector<64x3xbf16>
    %c2_59 = arith.constant 2 : index
    %c0_60 = arith.constant 0 : index
    %c0_61 = arith.constant 0 : index
    %c0_62 = arith.constant 0 : index
    %51 = vector.load %arg2[%c2_59, %c0_60, %c0_61, %c0_62] : memref<3x3x3x64xbf16, #tpu.memory_space<vmem>>, vector<1x1x3x64xbf16>
    %52 = vector.shape_cast %51 : vector<1x1x3x64xbf16> to vector<3x64xbf16>
    %cst_63 = arith.constant dense<0.000000e+00> : vector<64x64xf32>
    %53 = tpu.matmul %50, %52, %cst_63 {dimension_numbers = #tpu.dot_dimension_numbers<[1], [0], [0], [1], [0, 0, 1, 1], [], []>} : vector<64x3xbf16>, vector<3x64xbf16>, vector<64x64xf32> -> vector<64x64xf32>
    %54 = arith.addf %47, %53 : vector<64x64xf32>
    %c2_64 = arith.constant 2 : index
    %c1_65 = arith.constant 1 : index
    %c0_66 = arith.constant 0 : index
    %55 = vector.load %arg12[%c2_64, %c1_65, %c0_66] : memref<10x10x3xf32, #tpu.memory_space<vmem>>, vector<8x8x3xf32>
    %56 = vector.shape_cast %55 : vector<8x8x3xf32> to vector<64x3xf32>
    %57 = arith.truncf %56 : vector<64x3xf32> to vector<64x3xbf16>
    %c2_67 = arith.constant 2 : index
    %c1_68 = arith.constant 1 : index
    %c0_69 = arith.constant 0 : index
    %c0_70 = arith.constant 0 : index
    %58 = vector.load %arg2[%c2_67, %c1_68, %c0_69, %c0_70] : memref<3x3x3x64xbf16, #tpu.memory_space<vmem>>, vector<1x1x3x64xbf16>
    %59 = vector.shape_cast %58 : vector<1x1x3x64xbf16> to vector<3x64xbf16>
    %cst_71 = arith.constant dense<0.000000e+00> : vector<64x64xf32>
    %60 = tpu.matmul %57, %59, %cst_71 {dimension_numbers = #tpu.dot_dimension_numbers<[1], [0], [0], [1], [0, 0, 1, 1], [], []>} : vector<64x3xbf16>, vector<3x64xbf16>, vector<64x64xf32> -> vector<64x64xf32>
    %61 = arith.addf %54, %60 : vector<64x64xf32>
    %c2_72 = arith.constant 2 : index
    %c2_73 = arith.constant 2 : index
    %c0_74 = arith.constant 0 : index
    %62 = vector.load %arg12[%c2_72, %c2_73, %c0_74] : memref<10x10x3xf32, #tpu.memory_space<vmem>>, vector<8x8x3xf32>
    %63 = vector.shape_cast %62 : vector<8x8x3xf32> to vector<64x3xf32>
    %64 = arith.truncf %63 : vector<64x3xf32> to vector<64x3xbf16>
    %c2_75 = arith.constant 2 : index
    %c2_76 = arith.constant 2 : index
    %c0_77 = arith.constant 0 : index
    %c0_78 = arith.constant 0 : index
    %65 = vector.load %arg2[%c2_75, %c2_76, %c0_77, %c0_78] : memref<3x3x3x64xbf16, #tpu.memory_space<vmem>>, vector<1x1x3x64xbf16>
    %66 = vector.shape_cast %65 : vector<1x1x3x64xbf16> to vector<3x64xbf16>
    %cst_79 = arith.constant dense<0.000000e+00> : vector<64x64xf32>
    %67 = tpu.matmul %64, %66, %cst_79 {dimension_numbers = #tpu.dot_dimension_numbers<[1], [0], [0], [1], [0, 0, 1, 1], [], []>} : vector<64x3xbf16>, vector<3x64xbf16>, vector<64x64xf32> -> vector<64x64xf32>
    %68 = arith.addf %61, %67 : vector<64x64xf32>
    %c0_80 = arith.constant 0 : index
    %c0_81 = arith.constant 0 : index
    %69 = vector.load %arg3[%c0_80, %c0_81] : memref<1x64xf32, #tpu.memory_space<vmem>>, vector<1x64xf32>
    %70 = vector.broadcast %69 : vector<1x64xf32> to vector<64x64xf32>
    %71 = arith.addf %68, %70 : vector<64x64xf32>
    %cst_82 = arith.constant 0.000000e+00 : f32
    %72 = vector.broadcast %cst_82 : f32 to vector<64x64xf32>
    %73 = arith.maximumf %71, %72 : vector<64x64xf32>
    %cst_83 = arith.constant 0.000000e+00 : f32
    %74 = vector.broadcast %cst_83 : f32 to vector<10x10x64xf32>
    %c0_84 = arith.constant 0 : index
    %c0_85 = arith.constant 0 : index
    %c0_86 = arith.constant 0 : index
    %75 = vector.load %arg13[%c0_84, %c0_85, %c0_86] : memref<10x10x64xf32, #tpu.memory_space<vmem>>, vector<10x10x64xf32>
    tpu.vector_store %arg13[%c0_84, %c0_85, %c0_86], %74 {strides = array<i32>} : memref<10x10x64xf32, #tpu.memory_space<vmem>>, vector<10x10x64xf32>,
    %76 = vector.shape_cast %73 : vector<64x64xf32> to vector<8x8x64xf32>
    %c1_87 = arith.constant 1 : index
    %c1_88 = arith.constant 1 : index
    %c0_89 = arith.constant 0 : index
    %77 = vector.load %arg13[%c1_87, %c1_88, %c0_89] : memref<10x10x64xf32, #tpu.memory_space<vmem>>, vector<8x8x64xf32>
    tpu.vector_store %arg13[%c1_87, %c1_88, %c0_89], %76 {strides = array<i32>} : memref<10x10x64xf32, #tpu.memory_space<vmem>>, vector<8x8x64xf32>,
    %c0_90 = arith.constant 0 : index
    %c0_91 = arith.constant 0 : index
    %c0_92 = arith.constant 0 : index
    %78 = vector.load %arg13[%c0_90, %c0_91, %c0_92] : memref<10x10x64xf32, #tpu.memory_space<vmem>>, vector<8x8x64xf32>
    %c0_93 = arith.constant 0 : index
    %c1_94 = arith.constant 1 : index
    %c0_95 = arith.constant 0 : index
    %79 = vector.load %arg13[%c0_93, %c1_94, %c0_95] : memref<10x10x64xf32, #tpu.memory_space<vmem>>, vector<8x8x64xf32>
    %c0_96 = arith.constant 0 : index
    %c2_97 = arith.constant 2 : index
    %c0_98 = arith.constant 0 : index
    %80 = vector.load %arg13[%c0_96, %c2_97, %c0_98] : memref<10x10x64xf32, #tpu.memory_space<vmem>>, vector<8x8x64xf32>
    %c1_99 = arith.constant 1 : index
    %c0_100 = arith.constant 0 : index
    %c0_101 = arith.constant 0 : index
    %81 = vector.load %arg13[%c1_99, %c0_100, %c0_101] : memref<10x10x64xf32, #tpu.memory_space<vmem>>, vector<8x8x64xf32>
    %c1_102 = arith.constant 1 : index
    %c1_103 = arith.constant 1 : index
    %c0_104 = arith.constant 0 : index
    %82 = vector.load %arg13[%c1_102, %c1_103, %c0_104] : memref<10x10x64xf32, #tpu.memory_space<vmem>>, vector<8x8x64xf32>
    %c1_105 = arith.constant 1 : index
    %c2_106 = arith.constant 2 : index
    %c0_107 = arith.constant 0 : index
    %83 = vector.load %arg13[%c1_105, %c2_106, %c0_107] : memref<10x10x64xf32, #tpu.memory_space<vmem>>, vector<8x8x64xf32>
    %c2_108 = arith.constant 2 : index
    %c0_109 = arith.constant 0 : index
    %c0_110 = arith.constant 0 : index
    %84 = vector.load %arg13[%c2_108, %c0_109, %c0_110] : memref<10x10x64xf32, #tpu.memory_space<vmem>>, vector<8x8x64xf32>
    %c2_111 = arith.constant 2 : index
    %c1_112 = arith.constant 1 : index
    %c0_113 = arith.constant 0 : index
    %85 = vector.load %arg13[%c2_111, %c1_112, %c0_113] : memref<10x10x64xf32, #tpu.memory_space<vmem>>, vector<8x8x64xf32>
    %c2_114 = arith.constant 2 : index
    %c2_115 = arith.constant 2 : index
    %c0_116 = arith.constant 0 : index
    %86 = vector.load %arg13[%c2_114, %c2_115, %c0_116] : memref<10x10x64xf32, #tpu.memory_space<vmem>>, vector<8x8x64xf32>
    %87 = tpu.concatenate %78, %79, %80, %81, %82, %83, %84, %85, %86 in 2 : vector<8x8x64xf32>, vector<8x8x64xf32>, vector<8x8x64xf32>, vector<8x8x64xf32>, vector<8x8x64xf32>, vector<8x8x64xf32>, vector<8x8x64xf32>, vector<8x8x64xf32>, vector<8x8x64xf32> -> vector<8x8x576xf32>
    %88 = vector.shape_cast %87 : vector<8x8x576xf32> to vector<64x576xf32>
    %89 = arith.truncf %88 : vector<64x576xf32> to vector<64x576xbf16>
    %c0_117 = arith.constant 0 : index
    %c0_118 = arith.constant 0 : index
    %90 = vector.load %arg4[%c0_117, %c0_118] : memref<576x64xbf16, #tpu.memory_space<vmem>>, vector<576x64xbf16>
    %cst_119 = arith.constant dense<0.000000e+00> : vector<64x64xf32>
    %91 = tpu.matmul %89, %90, %cst_119 {dimension_numbers = #tpu.dot_dimension_numbers<[1], [0], [0], [1], [0, 0, 1, 1], [], []>} : vector<64x576xbf16>, vector<576x64xbf16>, vector<64x64xf32> -> vector<64x64xf32>
    %c0_120 = arith.constant 0 : index
    %c0_121 = arith.constant 0 : index
    %92 = vector.load %arg5[%c0_120, %c0_121] : memref<1x64xf32, #tpu.memory_space<vmem>>, vector<1x64xf32>
    %93 = vector.broadcast %92 : vector<1x64xf32> to vector<64x64xf32>
    %94 = arith.addf %91, %93 : vector<64x64xf32>
    %cst_122 = arith.constant 0.000000e+00 : f32
    %95 = vector.broadcast %cst_122 : f32 to vector<64x64xf32>
    %96 = arith.maximumf %94, %95 : vector<64x64xf32>
    %97 = vector.shape_cast %96 : vector<64x64xf32> to vector<8x8x64xf32>
    %c0_123 = arith.constant 0 : index
    %c0_124 = arith.constant 0 : index
    %98 = vector.load %arg8[%c0_123, %c0_124] : memref<16x8xf32, #tpu.memory_space<vmem>>, vector<16x8xf32>
    %c0_125 = arith.constant 0 : index
    %c0_126 = arith.constant 0 : index
    %99 = vector.load %arg9[%c0_125, %c0_126] : memref<8x16xf32, #tpu.memory_space<vmem>>, vector<8x16xf32>
    %c0_127 = arith.constant 0 : index
    %c0_128 = arith.constant 0 : index
    %100 = vector.load %arg6[%c0_127, %c0_128] : memref<1x64xf32, #tpu.memory_space<vmem>>, vector<1x64xf32>
    %101 = vector.shape_cast %100 : vector<1x64xf32> to vector<1x1x64xf32>
    %102 = vector.broadcast %101 : vector<1x1x64xf32> to vector<8x8x64xf32>
    %103 = arith.mulf %97, %102 : vector<8x8x64xf32>
    %cst_129 = arith.constant dense<0.000000e+00> : vector<8x8xf32>
    %104 = vector.multi_reduction <add>, %103, %cst_129 [2] : vector<8x8x64xf32> to vector<8x8xf32>
    %c0_130 = arith.constant 0 : index
    %105 = memref.load %arg7[%c0_130] : memref<1xf32, #tpu.memory_space<smem>>
    %106 = vector.broadcast %105 : f32 to vector<8x8xf32>
    %107 = arith.addf %104, %106 : vector<8x8xf32>
    %cst_131 = arith.constant dense<0.000000e+00> : vector<16x8xf32>
    %108 = tpu.matmul %98, %107, %cst_131 {dimension_numbers = #tpu.dot_dimension_numbers<[1], [0], [0], [1], [0, 0, 1, 1], [], []>} : vector<16x8xf32>, vector<8x8xf32>, vector<16x8xf32> -> vector<16x8xf32>
    %cst_132 = arith.constant dense<0.000000e+00> : vector<16x16xf32>
    %109 = tpu.matmul %108, %99, %cst_132 {dimension_numbers = #tpu.dot_dimension_numbers<[1], [0], [0], [1], [0, 0, 1, 1], [], []>} : vector<16x8xf32>, vector<8x16xf32>, vector<16x16xf32> -> vector<16x16xf32>
    %c0_133 = arith.constant 0 : index
    %c0_134 = arith.constant 0 : index
    %c0_135 = arith.constant 0 : index
    %c0_136 = arith.constant 0 : index
    %110 = vector.load %arg10[%c0_133, %c0_134, %c0_135, %c0_136] : memref<1x1x16x16xf32, #tpu.memory_space<vmem>>, vector<1x1x16x16xf32>
    %111 = vector.shape_cast %110 : vector<1x1x16x16xf32> to vector<16x16xf32>
    %112 = vector.shape_cast %109 : vector<16x16xf32> to vector<1x1x16x16xf32>
    tpu.vector_store %arg10[%c0_133, %c0_134, %c0_135, %c0_136], %112 {strides = array<i32>} : memref<1x1x16x16xf32, #tpu.memory_space<vmem>>, vector<1x1x16x16xf32>,
    %113 = arith.negf %109 : vector<16x16xf32>
    %114 = math.exp %113 : vector<16x16xf32>
    %cst_137 = arith.constant 1.000000e+00 : f32
    %115 = vector.broadcast %cst_137 : f32 to vector<16x16xf32>
    %116 = arith.addf %115, %114 : vector<16x16xf32>
    %117 = arith.divf %115, %116 : vector<16x16xf32>
    %c0_138 = arith.constant 0 : index
    %c0_139 = arith.constant 0 : index
    %c0_140 = arith.constant 0 : index
    %c0_141 = arith.constant 0 : index
    %118 = vector.load %arg11[%c0_138, %c0_139, %c0_140, %c0_141] : memref<1x1x16x16xf32, #tpu.memory_space<vmem>>, vector<1x1x16x16xf32>
    %119 = vector.shape_cast %118 : vector<1x1x16x16xf32> to vector<16x16xf32>
    %120 = vector.shape_cast %117 : vector<16x16xf32> to vector<1x1x16x16xf32>
    tpu.vector_store %arg11[%c0_138, %c0_139, %c0_140, %c0_141], %120 {strides = array<i32>} : memref<1x1x16x16xf32, #tpu.memory_space<vmem>>, vector<1x1x16x16xf32>,
    return
  }
  func.func @transform_0(%arg0: i32) -> (i32, i32, i32, i32) {
    %c0_i32 = arith.constant 0 : i32
    %c0_i32_0 = arith.constant 0 : i32
    %c0_i32_1 = arith.constant 0 : i32
    %c0_i32_2 = arith.constant 0 : i32
    return %arg0, %c0_i32, %c0_i32_0, %c0_i32_1 : i32, i32, i32, i32
  }
  func.func @transform_1(%arg0: i32) -> (i32, i32, i32, i32) {
    %c0_i32 = arith.constant 0 : i32
    %c0_i32_0 = arith.constant 0 : i32
    %c0_i32_1 = arith.constant 0 : i32
    %c0_i32_2 = arith.constant 0 : i32
    %c0_i32_3 = arith.constant 0 : i32
    return %c0_i32, %c0_i32_0, %c0_i32_1, %c0_i32_2 : i32, i32, i32, i32
  }
  func.func @transform_2(%arg0: i32) -> (i32, i32) {
    %c0_i32 = arith.constant 0 : i32
    %c0_i32_0 = arith.constant 0 : i32
    %c0_i32_1 = arith.constant 0 : i32
    return %c0_i32, %c0_i32_0 : i32, i32
  }
  func.func @transform_3(%arg0: i32) -> (i32, i32) {
    %c0_i32 = arith.constant 0 : i32
    %c0_i32_0 = arith.constant 0 : i32
    %c0_i32_1 = arith.constant 0 : i32
    return %c0_i32, %c0_i32_0 : i32, i32
  }
  func.func @transform_4(%arg0: i32) -> (i32, i32) {
    %c0_i32 = arith.constant 0 : i32
    %c0_i32_0 = arith.constant 0 : i32
    %c0_i32_1 = arith.constant 0 : i32
    return %c0_i32, %c0_i32_0 : i32, i32
  }
  func.func @transform_5(%arg0: i32) -> (i32, i32) {
    %c0_i32 = arith.constant 0 : i32
    %c0_i32_0 = arith.constant 0 : i32
    %c0_i32_1 = arith.constant 0 : i32
    return %c0_i32, %c0_i32_0 : i32, i32
  }
  func.func @transform_6(%arg0: i32) -> i32 {
    %c0_i32 = arith.constant 0 : i32
    %c0_i32_0 = arith.constant 0 : i32
    return %c0_i32 : i32
  }
  func.func @transform_7(%arg0: i32) -> (i32, i32) {
    %c0_i32 = arith.constant 0 : i32
    %c0_i32_0 = arith.constant 0 : i32
    %c0_i32_1 = arith.constant 0 : i32
    return %c0_i32, %c0_i32_0 : i32, i32
  }
  func.func @transform_8(%arg0: i32) -> (i32, i32) {
    %c0_i32 = arith.constant 0 : i32
    %c0_i32_0 = arith.constant 0 : i32
    %c0_i32_1 = arith.constant 0 : i32
    return %c0_i32, %c0_i32_0 : i32, i32
  }
  func.func @transform_9(%arg0: i32) -> (i32, i32, i32, i32) {
    %c0_i32 = arith.constant 0 : i32
    %c0_i32_0 = arith.constant 0 : i32
    %c0_i32_1 = arith.constant 0 : i32
    %c0_i32_2 = arith.constant 0 : i32
    return %arg0, %c0_i32, %c0_i32_0, %c0_i32_1 : i32, i32, i32, i32
  }
  func.func @transform_10(%arg0: i32) -> (i32, i32, i32, i32) {
    %c0_i32 = arith.constant 0 : i32
    %c0_i32_0 = arith.constant 0 : i32
    %c0_i32_1 = arith.constant 0 : i32
    %c0_i32_2 = arith.constant 0 : i32
    return %arg0, %c0_i32, %c0_i32_0, %c0_i32_1 : i32, i32, i32, i32
  }
}

</mosaic_0001>

<bundles_post_ra>
// kernel: tpu_custom_call.1
= control target key start
LH: loop header
LB: loop body
LE: loop exit
PB: predicated region body
PF: predicated region fallthrough
CT: control target
= control target key end

     0   :  { %s3371_s0 = inlined_call_operand.vmem [shape: f32[2,8,8,3], index: 0, kind: input, shape index: {}]   ;;  %s3372_s1 = inlined_call_operand.vmem [shape: bf16[3,3,3,64], index: 1, kind: input, shape index: {}]   ;;  %s3373_s2 = inlined_call_operand.vmem [shape: f32[1,64], index: 2, kind: input, shape index: {}]   ;;  %s3374_s3 = inlined_call_operand.vmem [shape: bf16[576,64], index: 3, kind: input, shape index: {}]   ;;  %s3375_s4 = inlined_call_operand.vmem [shape: f32[1,64], index: 4, kind: input, shape index: {}]   ;;  %s3376_s5 = inlined_call_operand.vmem [shape: f32[1,64], index: 5, kind: input, shape index: {}]   ;;  %s3377_s6 = inlined_call_operand.<no memory space> [shape: f32[1], index: 6, kind: input, shape index: {}]   ;;  %s3378_s7 = inlined_call_operand.vmem [shape: f32[16,8], index: 7, kind: input, shape index: {}]   ;;  %s3379_s8 = inlined_call_operand.vmem [shape: f32[8,16], index: 8, kind: input, shape index: {}]   ;;  %s3380_s9 = inlined_call_operand.hbm [shape: f32[2,1,16,16], index: 9, kind: output, shape index: {0}]   ;;  %s3381_s10 = inlined_call_operand.hbm [shape: f32[2,1,16,16], index: 10, kind: output, shape index: {1}]  }
   0x1   :  { %3384 = sst [smem:[#allocation11_spill]] %s3371_s0 }
   0x2   :  { %16 = sst [smem:[#allocation4]] %s3377_s6 }
   0x3   :  { %17 = vsyncpa [#allocation6], 0 }
   0x4   :  { %19 = vsyncpa [#allocation6 + $0x1], 0 }
   0x5   :  { %20 = vsyncpa [#allocation8], 0 }
   0x6   :  { %22 = vsyncpa [#allocation8 + $0x1], 0  ;;  %s2624_s15 = smov 0   ;;  %s2626_s16 = smov 0  }
   0x7   :  { %s2628_s17 = smov 0   ;;  %s2630_s18 = smov 0  }
   0x8 LB: > { %s2645_s6 = sadd.s32 4294967295, %s2559_s18   ;;  %s2070_s19 = sadd.s32 4294967294, %s2559_s18   ;;  %s2559_s18 = sphi %s2630_s18, %s3393_s18   ;;  %s2555_s17 = sphi %s2628_s17, %s3392_s17   ;;  %s2551_s16 = sphi %s2626_s16, %s3391_s16   ;;  %s2547_s15 = sphi %s2624_s15, %s3390_s15  }
   0x9   : > { %s2649_s20 = sadd.s32 1, %s2559_s18   ;;  %s229_s21 = sadd.s32 1, %s2555_s17 }
   0xa   : > { %s226_s22 = ssub.s32 %s2559_s18, %s2649_s20  ;;  %p239_p0 = scmp.ne.s32.totalorder %s2555_s17, %s2551_s16 }
   0xb   : > { %p227_p1 = scmp.eq.s32.totalorder %s226_s22, 0  ;;  %p240_p2 = scmp.eq.s32.totalorder %s2645_s6, 1 }
   0xc   : > { %p245_p3 = scmp.ne.s32.totalorder %s2551_s16, %s2547_s15  ;;  %p246_p4 = scmp.eq.s32.totalorder %s2070_s19, 1 }
   0xd   : > { %s2660_s23 = scalar_select %p227_p1, %s2555_s17, %s229_s21  }
   0xe   : > { %p2662_p5 = por %p240_p2, %p239_p0  ;;  %p2666_p6 = por %p246_p4, %p245_p3 }
   0xf   : > { %p2073_p7 = scmp.ge.s32.totalorder %s2559_s18, 1  ;;  %p322_p8 = scmp.lt.s32.totalorder %s2559_s18, 3 }
  0x11   : > { %p323_p9 = pnand %p2073_p7, %p322_p8 }
  0x12   : > { %p365_p10 = scmp.lt.s32.totalorder (!%p323_p9), %s2645_s6, 1  ;;  %s3387_s0 = sld [smem:[#allocation11_spill]] (!%p323_p9) }
  0x13   : > { %326 = sbr.rel (%p323_p9) target bundleno = 1097 (0x449), region = 56  ;;  %s2563_s27 = smov (!%p323_p9), 64  }
  0x14   : > { %s3382_s12 = sshll.u32 (!%p323_p9), %s2645_s6, 4 }
  0x15   : > { %s1954_s21 = scalar_lea.hbm (!%p323_p9), %s3380_s9, %s3382_s12 }
  0x18   : > { %v2078_v0 = vld [vmem:[%s3372_s1 + $0x2] sm:$0x3]  ;;  %vm449_vm0 = vcmask 1040384   ;;  %vm450_vm1 = vcmask 1041408   ;;  %v2561_v1 = vmov 65535   ;;  %vm371_vm2 = vcmask 23552  }
  0x19   : > { %v451_v2 = vsel %vm449_vm0, 4294967295, %v2561_v1  ;;  %v422_v3 = vld [vmem:[%s3372_s1] sm:$0x3]  ;;  %vm373_vm3 = vcmask 17408   ;;  %s366_s30 = scalar_select %p365_p10, %s2645_s6, 1  ;;  %v2562_v5 = vmov 0.0  }
  0x1a   : > { %v2679_v4 = vsel %vm450_vm1, %v451_v2, 0  ;;  %372 = vst.msk [vmem:[#allocation2] sm:$0xff] %vm371_vm2, %v2562_v5  ;;  %v2087_v6 = vld [vmem:[%s3372_s1 + $0x4] sm:$0x3]  ;;  %v2092_v10 = vld [vmem:[%s3372_s1 + $0x6] sm:$0x3] }
  0x1b   : > { %v454_v7 = vand.u32 %v2078_v0, %v2679_v4  ;;  %v498_v8 = vand.u32 %v2679_v4, %v422_v3  ;;  %374 = vst.msk [vmem:[#allocation2 + $0x8] sm:$0x3] %vm373_vm3, %v2562_v5  ;;  %v556_v9 = vand.u32 %v2087_v6, %v2679_v4  ;;  %s2284_s19 = sshll.u32 %s366_s30, 6  ;;  %v622_v11 = vand.u32 %v2092_v10, %v2679_v4  ;;  %v2097_v37 = vld [vmem:[%s3372_s1 + $0x8] sm:$0x3]  ;;  %s3304_s30 = sand.u32 1, %s2551_s16  }
  0x1c   : > { %375 = vst.msk [vmem:[#allocation2 + $0x10] sm:$0xff] %vm371_vm2, %v2562_v5  ;;  %s2701_s26 = scalar_lea.vmem %s3387_s0, %s2284_s19  ;;  %v688_v38 = vand.u32 %v2097_v37, %v2679_v4  ;;  %v2102_v39 = vld [vmem:[%s3372_s1 + $0xa] sm:$0x3]  ;;  %v2107_v58 = vld [vmem:[%s3372_s1 + $0xc] sm:$0x3]  ;;  %vm1012_vm4 = vcmask 523264  }
  0x1d   : > { %463 = vmatpush.bf16.msra.mxu0 %v454_v7  ;;  %2323 = vmatpush.bf16.msra.mxu2 %v454_v7  ;;  %376 = vst.msk [vmem:[#allocation2 + $0x18] sm:$0x3] %vm373_vm3, %v2562_v5  ;;  %v393_v12 = vld [vmem:[%s2701_s26] sm:$0xff]  ;;  %v398_v19 = vld [vmem:[%s2701_s26 + $0x28] sm:$0xff]  ;;  %v399_v20 = vld [vmem:[%s2701_s26 + $0x30] sm:$0xff]  ;;  %v754_v40 = vand.u32 %v2102_v39, %v2679_v4  ;;  %v821_v60 = vand.u32 %v2107_v58, %v2679_v4  ;;  %vm1014_vm5 = vcmask 517120  }
  0x1e   : > { %507 = vmatpush.bf16.msra.mxu1 %v498_v8  ;;  %2324 = vmatpush.bf16.msra.mxu3 %v498_v8  ;;  %377 = vst.msk [vmem:[#allocation2 + $0x20] sm:$0xff] %vm371_vm2, %v2562_v5  ;;  %v394_v21 = vld [vmem:[%s2701_s26 + $0x8] sm:$0xff]  ;;  %v395_v22 = vld [vmem:[%s2701_s26 + $0x10] sm:$0xff]  ;;  %v396_v23 = vld [vmem:[%s2701_s26 + $0x18] sm:$0xff]  ;;  %s1792_s19 = sld [smem:[#allocation4]]  ;;  %vm1820_vm6 = vcmask 1041409  }
  0x1f   : > { %402 = vst.msk [vmem:[#allocation2 + $0x11] sm:$0xff] %vm371_vm2, %v393_v12  ;;  %v397_v24 = vld [vmem:[%s2701_s26 + $0x20] sm:$0xff]  ;;  %v400_v51 = vld [vmem:[%s2701_s26 + $0x38] sm:$0xff]  ;;  %v2112_v59 = vld [vmem:[%s3372_s1 + $0xe] sm:$0x3]  ;;  %vm1822_vm7 = vcmask 1042434  }
  0x20   : > { %378 = vst.msk [vmem:[#allocation2 + $0x28] sm:$0x3] %vm373_vm3, %v2562_v5  ;;  %v887_v61 = vand.u32 %v2112_v59, %v2679_v4  ;;  %vm1824_vm8 = vcmask 1043459   ;;  %vm1826_vm9 = vcmask 1044484   ;;  %vm1828_vm10 = vcmask 1045509   ;;  %s3383_s11 = sshll.u32 %s3304_s30, 4 }
  0x21   : > { %565 = vmatpush.bf16.msrb.mxu2 %v556_v9  ;;  %379 = vst.msk [vmem:[#allocation2 + $0x30] sm:$0xff] %vm371_vm2, %v2562_v5  ;;  %v410_v14 = vld [vmem:[#allocation2] sm:$0xff]  ;;  %697 = vmatpush.bf16.msrb.mxu0 %v688_v38  ;;  %vm1830_vm11 = vcmask 1046534   ;;  %vm1832_vm12 = vcmask 1047559   ;;  %vm1835_vm13 = vcmask 64512   ;;  %vm1894_vm14 = vcmask 130048  }
  0x22   : > { %631 = vmatpush.bf16.msrb.mxu3 %v622_v11  ;;  %380 = vst.msk [vmem:[#allocation2 + $0x38] sm:$0x3] %vm373_vm3, %v2562_v5  ;;  %v423_v13 = vld [vmem:[#allocation2 + $0x1] sm:$0xff]  ;;  %763 = vmatpush.bf16.msrb.mxu1 %v754_v40  ;;  %s357_s13 = scalar_lea.vmem [#allocation5], %s3383_s11  ;;  %s1957_s26 = sshll.u32 %s1954_s21, 4  ;;  %s1958_s26 = int_to_ptr.hbm [resolvable:$true] %s1957_s26 }
  0x23   : > { %381 = vst.msk [vmem:[#allocation2 + $0x40] sm:$0xff] %vm371_vm2, %v2562_v5  ;;  %v529_v41 = vld [vmem:[#allocation2 + $0x2] sm:$0xff]  ;;  %s1955_s22 = sshll.u32 %s357_s13, 4  ;;  %s2479_s28 = sshra.s32 %s1958_s26, 4  ;;  %s1956_s22 = int_to_ptr.vmem [resolvable:$true] %s1955_s22  ;;  %s2480_s28 = int_to_ptr.hbm [resolvable:$true] %s2479_s28 }
  0x24   : > { %382 = vst.msk [vmem:[#allocation2 + $0x48] sm:$0x3] %vm373_vm3, %v2562_v5  ;;  %s2481_s29 = scalar_lea.hbm %s2480_s28, 16  ;;  %s2485_s21 = scalar_lea.hbm %s3380_s9, 32 }
  0x25   : > { %383 = vst.msk [vmem:[#allocation2 + $0x50] sm:$0xff] %vm371_vm2, %v2562_v5  ;;  %p2482_p11 = scmp.ne.s32.totalorder %s2480_s28, %s2481_s29  ;;  %p2486_p0 = scmp.lt.s32.totalorder %s2480_s28, %s3380_s9 }
  0x26   : > { %v2721_v15 = vld [vmem:[#allocation2 + $0x11] sm:$0xff]  ;;  %384 = vst.msk [vmem:[#allocation2 + $0x58] sm:$0x3] %vm373_vm3, %v2562_v5  ;;  %p2487_p1 = scmp.lt.s32.totalorder %s2485_s21, %s2481_s29 }
  0x27   : > { %v411_v16 = vld [vmem:[#allocation2 + $0x10] sm:$0xff]  ;;  %v431_v17 = vpack.c.bf16 %v2721_v15, %v423_v13  ;;  %385 = vst.msk [vmem:[#allocation2 + $0x60] sm:$0xff] %vm371_vm2, %v2562_v5  ;;  %p2483_p12 = pnand %p2482_p11, %p2662_p5 }
  0x28   : > { %v418_v18 = vpack.c.bf16 %v411_v16, %v410_v14  ;;  %386 = vst.msk [vmem:[#allocation2 + $0x68] sm:$0x3] %vm373_vm3, %v2562_v5  ;;  %v530_v42 = vld [vmem:[#allocation2 + $0x12] sm:$0xff]  ;;  %v2117_v13 = vld [vmem:[%s3372_s1 + $0x10] sm:$0x3]  ;;  %p2488_p2 = por %p2487_p1, %p2486_p0 }
  0x29   : > { %2079 = vmatmul.msk.bf16.vlgmr.msra.gmra.mxu0 %vm371_vm2, %v431_v17  ;;  %387 = vst.msk [vmem:[#allocation2 + $0x70] sm:$0xff] %vm371_vm2, %v2562_v5  ;;  %v537_v47 = vpack.c.bf16 %v530_v42, %v529_v41  ;;  %v953_v14 = vand.u32 %v2117_v13, %v2679_v4  ;;  %p2484_p13 = pneg %p2483_p12 }
  0x2a   : > { %2083 = vmatmul.msk.bf16.vlgmr.msra.gmra.mxu1 %vm371_vm2, %v418_v18  ;;  %388 = vst.msk [vmem:[#allocation2 + $0x78] sm:$0x3] %vm373_vm3, %v2562_v5 }
  0x2b   : > { %389 = vst.msk [vmem:[#allocation2 + $0x80] sm:$0xff] %vm371_vm2, %v2562_v5  ;;  %962 = vmatpush.bf16.msra.mxu0 %v953_v14  ;;  %p2489_p3 = pnand %p2488_p2, %p2484_p13 }
  0x2c   : > { %390 = vst.msk [vmem:[#allocation2 + $0x88] sm:$0x3] %vm373_vm3, %v2562_v5 }
  0x2d   : > { %391 = vst.msk [vmem:[#allocation2 + $0x90] sm:$0xff] %vm371_vm2, %v2562_v5 }
  0x2e   : > { %392 = vst.msk [vmem:[#allocation2 + $0x98] sm:$0x3] %vm373_vm3, %v2562_v5 }
  0x2f   : > { %407 = vst.msk [vmem:[#allocation2 + $0x61] sm:$0xff] %vm371_vm2, %v398_v19 }
  0x30   : > { %408 = vst.msk [vmem:[#allocation2 + $0x71] sm:$0xff] %vm371_vm2, %v399_v20 }
  0x31   : > { %403 = vst.msk [vmem:[#allocation2 + $0x21] sm:$0xff] %vm371_vm2, %v394_v21 }
  0x32   : > { %404 = vst.msk [vmem:[#allocation2 + $0x31] sm:$0xff] %vm371_vm2, %v395_v22 }
  0x33   : > { %405 = vst.msk [vmem:[#allocation2 + $0x41] sm:$0xff] %vm371_vm2, %v396_v23 }
  0x34   : > { %406 = vst.msk [vmem:[#allocation2 + $0x51] sm:$0xff] %vm371_vm2, %v397_v24  ;;  %v801_v20 = vld [vmem:[#allocation2 + $0x90] sm:$0xff] }
  0x35   : > { %409 = vst.msk [vmem:[#allocation2 + $0x81] sm:$0xff] %vm371_vm2, %v400_v51  ;;  %v867_v21 = vld [vmem:[#allocation2 + $0x91] sm:$0xff] }
  0x36   : > { %v2756_v25 = vld [vmem:[#allocation2 + $0x61] sm:$0xff]  ;;  %1016 = vst.msk [vmem:[#allocation3 + $0x10] sm:$0xff] %vm1012_vm4, %v2562_v5 }
  0x37   : > { %v416_v26 = vld [vmem:[#allocation2 + $0x60] sm:$0xff]  ;;  %v2758_v27 = vld [vmem:[#allocation2 + $0x71] sm:$0xff]  ;;  %1017 = vst.msk [vmem:[#allocation3 + $0x18] sm:$0x3] %vm1014_vm5, %v2562_v5 }
  0x38   : > { %v2760_v28 = vld [vmem:[#allocation2 + $0x70] sm:$0xff]  ;;  %v2764_v29 = vpack.c.bf16 %v2758_v27, %v2756_v25  ;;  %v425_v31 = vld [vmem:[#allocation2 + $0x21] sm:$0xff]  ;;  %1013 = vst.msk [vmem:[#allocation3] sm:$0xff] %vm1012_vm4, %v2562_v5 }
  0x39   : > { %v2767_v30 = vpack.c.bf16 %v2760_v28, %v416_v26  ;;  %v412_v32 = vld [vmem:[#allocation2 + $0x20] sm:$0xff]  ;;  %v426_v33 = vld [vmem:[#allocation2 + $0x31] sm:$0xff]  ;;  %v669_v56 = vpack.c.bf16 %v425_v31, %v2721_v15  ;;  %1015 = vst.msk [vmem:[#allocation3 + $0x8] sm:$0x3] %vm1014_vm5, %v2562_v5 }
  0x3a   : > { %v413_v34 = vld [vmem:[#allocation2 + $0x30] sm:$0xff]  ;;  %2082 = vmatmul.msk.bf16.vlgmr.msra.gmra.mxu2 %vm371_vm2, %v2764_v29  ;;  %v2773_v35 = vpack.c.bf16 %v426_v33, %v425_v31  ;;  %v427_v43 = vld [vmem:[#allocation2 + $0x41] sm:$0xff]  ;;  %v603_v48 = vpack.c.bf16 %v412_v32, %v411_v16  ;;  %1018 = vst.msk [vmem:[#allocation3 + $0x20] sm:$0xff] %vm1012_vm4, %v2562_v5 }
  0x3b   : > { %2086 = vmatmul.msk.bf16.vlgmr.msra.gmra.mxu3 %vm371_vm2, %v2767_v30  ;;  %v2775_v36 = vpack.c.bf16 %v413_v34, %v412_v32  ;;  %v428_v44 = vld [vmem:[#allocation2 + $0x51] sm:$0xff]  ;;  %v414_v45 = vld [vmem:[#allocation2 + $0x40] sm:$0xff]  ;;  %830 = vmatpush.bf16.msra.mxu2 %v821_v60  ;;  %v670_v2 = vpack.c.bf16 %v427_v43, %v426_v33  ;;  %1019 = vst.msk [vmem:[#allocation3 + $0x28] sm:$0x3] %vm1014_vm5, %v2562_v5 }
  0x3c   : > { %2080 = vmatmul.msk.bf16.gmra.mxu0 %vm371_vm2, %v2773_v35  ;;  %v415_v46 = vld [vmem:[#allocation2 + $0x50] sm:$0xff]  ;;  %v433_v49 = vpack.c.bf16 %v428_v44, %v427_v43  ;;  %v531_v52 = vld [vmem:[#allocation2 + $0x22] sm:$0xff]  ;;  %v604_v55 = vpack.c.bf16 %v414_v45, %v413_v34  ;;  %896 = vmatpush.bf16.msra.mxu3 %v887_v61  ;;  %v671_v11 = vpack.c.bf16 %v2756_v25, %v428_v44 }
  0x3d   : > { %2084 = vmatmul.msk.bf16.gmra.mxu1 %vm371_vm2, %v2775_v36  ;;  %v420_v50 = vpack.c.bf16 %v415_v46, %v414_v45  ;;  %v532_v53 = vld [vmem:[#allocation2 + $0x32] sm:$0xff]  ;;  %v735_v57 = vpack.c.bf16 %v531_v52, %v530_v42  ;;  %v533_v62 = vld [vmem:[#allocation2 + $0x42] sm:$0xff]  ;;  %v605_v1 = vpack.c.bf16 %v416_v26, %v415_v46  ;;  %1020 = vst.msk [vmem:[#allocation3 + $0x30] sm:$0xff] %vm1012_vm4, %v2562_v5 }
  0x3e   : > { %v538_v54 = vpack.c.bf16 %v532_v53, %v531_v52  ;;  %v534_v63 = vld [vmem:[#allocation2 + $0x52] sm:$0xff]  ;;  %v736_v3 = vpack.c.bf16 %v533_v62, %v532_v53  ;;  %v535_v6 = vld [vmem:[#allocation2 + $0x62] sm:$0xff]  ;;  %1021 = vst.msk [vmem:[#allocation3 + $0x38] sm:$0x3] %vm1014_vm5, %v2562_v5 }
  0x3f   : > { %v539_v0 = vpack.c.bf16 %v534_v63, %v533_v62  ;;  %v536_v7 = vld [vmem:[#allocation2 + $0x72] sm:$0xff]  ;;  %v602_v8 = vld [vmem:[#allocation2 + $0x80] sm:$0xff]  ;;  %v737_v12 = vpack.c.bf16 %v535_v6, %v534_v63  ;;  %1022 = vst.msk [vmem:[#allocation3 + $0x40] sm:$0xff] %vm1012_vm4, %v2562_v5 }
  0x40   : > { %v540_v9 = vpack.c.bf16 %v536_v7, %v535_v6  ;;  %v606_v10 = vpack.c.bf16 %v602_v8, %v2760_v28  ;;  %v668_v15 = vld [vmem:[#allocation2 + $0x81] sm:$0xff]  ;;  %v805_v22 = vpack.c.bf16 %v801_v20, %v602_v8  ;;  %v933_v31 = vld [vmem:[#allocation2 + $0x92] sm:$0xff]  ;;  %1023 = vst.msk [vmem:[#allocation3 + $0x48] sm:$0x3] %vm1014_vm5, %v2562_v5 }
  0x41   : > { %v734_v16 = vld [vmem:[#allocation2 + $0x82] sm:$0xff]  ;;  %v672_v17 = vpack.c.bf16 %v668_v15, %v2758_v27  ;;  %v871_v23 = vpack.c.bf16 %v867_v21, %v668_v15  ;;  %1024 = vst.msk [vmem:[#allocation3 + $0x50] sm:$0xff] %vm1012_vm4, %v2562_v5 }
  0x42   : > { %v738_v18 = vpack.c.bf16 %v734_v16, %v536_v7  ;;  %v937_v33 = vpack.c.bf16 %v933_v31, %v734_v16  ;;  %1025 = vst.msk [vmem:[#allocation3 + $0x58] sm:$0x3] %vm1014_vm5, %v2562_v5 }
  0x43   : > { %1026 = vst.msk [vmem:[#allocation3 + $0x60] sm:$0xff] %vm1012_vm4, %v2562_v5 }
  0x44   : > { %1027 = vst.msk [vmem:[#allocation3 + $0x68] sm:$0x3] %vm1014_vm5, %v2562_v5 }
  0x45   : > { %1028 = vst.msk [vmem:[#allocation3 + $0x70] sm:$0xff] %vm1012_vm4, %v2562_v5 }
  0x46   : > { %1029 = vst.msk [vmem:[#allocation3 + $0x78] sm:$0x3] %vm1014_vm5, %v2562_v5 }
  0x47   : > { %1030 = vst.msk [vmem:[#allocation3 + $0x80] sm:$0xff] %vm1012_vm4, %v2562_v5 }
  0x48   : > { %1031 = vst.msk [vmem:[#allocation3 + $0x88] sm:$0x3] %vm1014_vm5, %v2562_v5 }
  0x49   : > { %1032 = vst.msk [vmem:[#allocation3 + $0x90] sm:$0xff] %vm1012_vm4, %v2562_v5 }
  0x4a   : > { %2088 = vmatmul.msk.bf16.vlgmr.msrb.gmra.mxu2 %vm371_vm2, %v537_v47  ;;  %1033 = vst.msk [vmem:[#allocation3 + $0x98] sm:$0x3] %vm1014_vm5, %v2562_v5 }
  0x4b   : > { %2093 = vmatmul.msk.bf16.vlgmr.msrb.gmra.mxu3 %vm371_vm2, %v603_v48 }
  0x4c   : > { %2081 = vmatmul.msk.bf16.gmra.mxu0 %vm371_vm2, %v433_v49 }
  0x4d   : > { %2085 = vmatmul.msk.bf16.gmra.mxu1 %vm371_vm2, %v420_v50 }
  0x5a   : > { %2089 = vmatmul.msk.bf16.gmra.mxu2 %vm371_vm2, %v538_v54 }
  0x5b   : > { %2094 = vmatmul.msk.bf16.gmra.mxu3 %vm371_vm2, %v604_v55 }
  0x5c   : > { %2098 = vmatmul.msk.bf16.vlgmr.msrb.gmra.mxu0 %vm371_vm2, %v669_v56 }
  0x5d   : > { %2103 = vmatmul.msk.bf16.vlgmr.msrb.gmra.mxu1 %vm371_vm2, %v735_v57 }
  0x6a   : > { %2090 = vmatmul.msk.bf16.gmra.mxu2 %vm371_vm2, %v539_v0 }
  0x6b   : > { %2095 = vmatmul.msk.bf16.gmra.mxu3 %vm371_vm2, %v605_v1 }
  0x6c   : > { %2099 = vmatmul.msk.bf16.gmra.mxu0 %vm371_vm2, %v670_v2 }
  0x6d   : > { %2104 = vmatmul.msk.bf16.gmra.mxu1 %vm371_vm2, %v736_v3 }
  0x7a   : > { %2091 = vmatmul.msk.bf16.gmra.mxu2 %vm371_vm2, %v540_v9 }
  0x7b   : > { %2096 = vmatmul.msk.bf16.gmra.mxu3 %vm371_vm2, %v606_v10 }
  0x7c   : > { %2100 = vmatmul.msk.bf16.gmra.mxu0 %vm371_vm2, %v671_v11 }
  0x7d   : > { %2105 = vmatmul.msk.bf16.gmra.mxu1 %vm371_vm2, %v737_v12 }
  0x8a   : > { %2108 = vmatmul.msk.bf16.vlgmr.msra.gmra.mxu2 %vm371_vm2, %v2775_v36 }
  0x8b   : > { %2113 = vmatmul.msk.bf16.vlgmr.msra.gmra.mxu3 %vm371_vm2, %v2773_v35 }
  0x8c   : > { %2101 = vmatmul.msk.bf16.gmra.mxu0 %vm371_vm2, %v672_v17 }
  0x8d   : > { %2106 = vmatmul.msk.bf16.gmra.mxu1 %vm371_vm2, %v738_v18 }
  0x9a   : > { %2109 = vmatmul.msk.bf16.gmra.mxu2 %vm371_vm2, %v420_v50 }
  0x9b   : > { %2114 = vmatmul.msk.bf16.gmra.mxu3 %vm371_vm2, %v433_v49 }
  0x9c   : > { %2118 = vmatmul.msk.bf16.vlgmr.msra.gmra.mxu0 %vm371_vm2, %v538_v54 }
  0xa6   : > { %v465_v4 = vpop.f32.mrf.mxu0 }
  0xa7   : > { %v509_v32 = vpop.f32.mrf.mxu1 }
  0xaa   : > { %2110 = vmatmul.msk.bf16.gmra.mxu2 %vm371_vm2, %v2767_v30 }
  0xab   : > { %2115 = vmatmul.msk.bf16.gmra.mxu3 %vm371_vm2, %v2764_v29 }
  0xac   : > { %2119 = vmatmul.msk.bf16.gmra.mxu0 %vm371_vm2, %v539_v0  ;;  %v510_v0 = vadd.f32 %v509_v32, %v465_v4 }
  0xae   : > { %v2837_v19 = vpop.f32.mrf.mxu0 }
  0xaf   : > { %v511_v37 = vpop.f32.mrf.mxu1 }
  0xb9   : > { %v2839_v24 = vpop.f32.mrf.mxu0 }
  0xba   : > { %2111 = vmatmul.msk.bf16.gmra.mxu2 %vm371_vm2, %v805_v22  ;;  %v514_v42 = vpop.f32.mrf.mxu1  ;;  %v2932_v22 = vld [vmem:[%s3373_s2] ss:$0 sm:$0xff] }
  0xbb   : > { %2116 = vmatmul.msk.bf16.gmra.mxu3 %vm371_vm2, %v871_v23  ;;  %v515_v4 = vadd.f32 %v514_v42, %v2839_v24 }
  0xbc   : > { %2120 = vmatmul.msk.bf16.gmra.mxu0 %vm371_vm2, %v540_v9  ;;  %v512_v9 = vadd.f32 %v511_v37, %v2837_v19 }
  0xbd   : > { %v480_v25 = vpop.f32.mrf.mxu2 }
  0xbe   : > { %v524_v26 = vpop.f32.mrf.mxu3 }
  0xbf   : > { %v2844_v27 = vadd.f32 %v524_v26, %v480_v25 }
  0xc1   : > { %v2846_v28 = vpop.f32.mrf.mxu0 }
  0xc2   : > { %v2859_v46 = vpop.f32.mrf.mxu1 }
  0xc5   : > { %v2848_v29 = vpop.f32.mrf.mxu2 }
  0xc6   : > { %v2850_v30 = vpop.f32.mrf.mxu3 }
  0xc9   : > { %v2852_v34 = vpop.f32.mrf.mxu0 }
  0xca   : > { %v2871_v52 = vpop.f32.mrf.mxu1 }
  0xcc   : > { %2121 = vmatmul.msk.bf16.gmra.mxu0 %vm371_vm2, %v937_v33 }
  0xcd   : > { %v567_v35 = vpop.f32.mrf.mxu2 }
  0xce   : > { %v633_v36 = vpop.f32.mrf.mxu3  ;;  %v587_v1 = vadd.f32 %v567_v35, %v510_v0 }
  0xd0   : > { %v653_v6 = vadd.f32 %v633_v36, %v587_v1  ;;  %v517_v36 = vadd.f32 %v2859_v46, %v2846_v28  ;;  %v1051_v28 = vld [vmem:[#allocation3 + $0x1] sm:$0xff]  ;;  %v520_v46 = vadd.f32 %v2871_v52, %v2852_v34 }
  0xd1   : > { %v2855_v38 = vpop.f32.mrf.mxu0 }
  0xd2   : > { %v2879_v56 = vpop.f32.mrf.mxu1 }
  0xd5   : > { %v569_v39 = vpop.f32.mrf.mxu2 }
  0xd6   : > { %v635_v40 = vpop.f32.mrf.mxu3  ;;  %v588_v11 = vadd.f32 %v569_v39, %v512_v9 }
  0xd8   : > { %v654_v14 = vadd.f32 %v635_v40, %v588_v11 }
  0xd9   : > { %v699_v41 = vpop.f32.mrf.mxu0 }
  0xda   : > { %v765_v60 = vpop.f32.mrf.mxu1  ;;  %v719_v10 = vadd.f32 %v699_v41, %v653_v6 }
  0xdc   : > { %v785_v13 = vadd.f32 %v765_v60, %v719_v10 }
  0xdd   : > { %v572_v43 = vpop.f32.mrf.mxu2 }
  0xde   : > { %v2857_v44 = vpop.f32.mrf.mxu3  ;;  %v589_v20 = vadd.f32 %v572_v43, %v515_v4 }
  0xe0   : > { %v655_v26 = vadd.f32 %v2857_v44, %v589_v20 }
  0xe1   : > { %v701_v45 = vpop.f32.mrf.mxu0 }
  0xe2   : > { %v767_v3 = vpop.f32.mrf.mxu1  ;;  %v720_v19 = vadd.f32 %v701_v45, %v654_v14 }
  0xe4   : > { %v786_v24 = vadd.f32 %v767_v3, %v720_v19 }
  0xe5   : > { %v2861_v47 = vpop.f32.mrf.mxu2 }
  0xe6   : > { %v2863_v48 = vpop.f32.mrf.mxu3  ;;  %v590_v41 = vadd.f32 %v2861_v47, %v517_v36 }
  0xe8   : > { %v656_v60 = vadd.f32 %v2863_v48, %v590_v41 }
  0xe9   : > { %v2865_v49 = vpop.f32.mrf.mxu0 }
  0xea   : > { %v770_v15 = vpop.f32.mrf.mxu1  ;;  %v721_v37 = vadd.f32 %v2865_v49, %v655_v26 }
  0xec   : > { %v787_v44 = vadd.f32 %v770_v15, %v721_v37 }
  0xed   : > { %v2867_v50 = vpop.f32.mrf.mxu2 }
  0xee   : > { %v2869_v51 = vpop.f32.mrf.mxu3 }
  0xf1   : > { %v2873_v53 = vpop.f32.mrf.mxu0 }
  0xf2   : > { %v772_v40 = vpop.f32.mrf.mxu1  ;;  %v722_v49 = vadd.f32 %v2873_v53, %v656_v60  ;;  %v527_v60 = vadd.f32 %v2850_v30, %v2848_v29 }
  0xf4   : > { %v788_v11 = vadd.f32 %v772_v40, %v722_v49 }
  0xf5   : > { %v2875_v54 = vpop.f32.mrf.mxu2 }
  0xf6   : > { %v2877_v55 = vpop.f32.mrf.mxu3 }
  0xf9   : > { %v2881_v57 = vpop.f32.mrf.mxu0 }
  0xfa   : > { %v775_v9 = vpop.f32.mrf.mxu1 }
  0xfd   : > { %v2883_v58 = vpop.f32.mrf.mxu2 }
  0xfe   : > { %v2885_v59 = vpop.f32.mrf.mxu3  ;;  %v593_v37 = vadd.f32 %v2883_v58, %v2844_v27 }
 0x101   : > { %v2887_v61 = vpop.f32.mrf.mxu0 }
 0x105   : > { %v2889_v62 = vpop.f32.mrf.mxu2 }
 0x106   : > { %v2891_v63 = vpop.f32.mrf.mxu3 }
 0x109   : > { %v2893_v2 = vpop.f32.mrf.mxu0 }
 0x10d   : > { %v832_v7 = vpop.f32.mrf.mxu2 }
 0x10e   : > { %v898_v8 = vpop.f32.mrf.mxu3  ;;  %v852_v16 = vadd.f32 %v832_v7, %v785_v13  ;;  %v591_v7 = vadd.f32 %v2867_v50, %v520_v46  ;;  %v522_v50 = vadd.f32 %v2879_v56, %v2855_v38  ;;  %v777_v38 = vpop.f32.mrf.mxu1  ;;  %v594_v46 = vadd.f32 %v2889_v62, %v527_v60 }
 0x110   : > { %v918_v21 = vadd.f32 %v898_v8, %v852_v16  ;;  %v657_v34 = vadd.f32 %v2869_v51, %v591_v7  ;;  %v592_v19 = vadd.f32 %v2875_v54, %v522_v50  ;;  %v660_v30 = vadd.f32 %v2891_v63, %v594_v46 }
 0x111   : > { %v2912_v12 = vpop.f32.mrf.mxu0 }
 0x112   : > { %v723_v15 = vadd.f32 %v2881_v57, %v657_v34  ;;  %v658_v56 = vadd.f32 %v2877_v55, %v592_v19  ;;  %v726_v62 = vadd.f32 %v2912_v12, %v660_v30  ;;  %v2294_v30 = vld [vmem:[%s3374_s3 + $0x48] sm:$0xff] }
 0x114   : > { %v724_v54 = vadd.f32 %v2887_v61, %v658_v56  ;;  %v2308_v56 = vld [vmem:[%s3374_s3 + $0xb8] sm:$0xff] }
 0x115   : > { %v834_v17 = vpop.f32.mrf.mxu2  ;;  %1658 = vmatpush.bf16.msrb.mxu3 %v2308_v56 }
 0x116   : > { %v900_v18 = vpop.f32.mrf.mxu3  ;;  %v853_v31 = vadd.f32 %v834_v17, %v786_v24 }
 0x118   : > { %v919_v42 = vadd.f32 %v900_v18, %v853_v31 }
 0x119   : > { %v964_v23 = vpop.f32.mrf.mxu0 }
 0x11a   : > { %v984_v25 = vadd.f32 %v964_v23, %v918_v21  ;;  %v789_v23 = vadd.f32 %v775_v9, %v723_v15 }
 0x11c   : > { %v996_v32 = vadd.f32 %v2932_v22, %v984_v25 }
 0x11d   : > { %v837_v33 = vpop.f32.mrf.mxu2 }
 0x11e   : > { %v903_v35 = vpop.f32.mrf.mxu3  ;;  %v1004_v39 = vmax.f32 %v996_v32, 0.0  ;;  %v854_v5 = vadd.f32 %v837_v33, %v787_v44  ;;  %v659_v44 = vadd.f32 %v2885_v59, %v593_v37 }
 0x120   : > { %1035 = vst.msk [vmem:[#allocation3 + $0x11] sm:$0xff] %vm1012_vm4, %v1004_v39  ;;  %v920_v8 = vadd.f32 %v903_v35, %v854_v5  ;;  %v725_v5 = vadd.f32 %v2893_v2, %v659_v44  ;;  %v1107_v44 = vld [vmem:[#allocation3 + $0x91] sm:$0xff] }
 0x121   : > { %v966_v43 = vpop.f32.mrf.mxu0 }
 0x122   : > { %v985_v45 = vadd.f32 %v966_v43, %v919_v42  ;;  %v790_v42 = vadd.f32 %v777_v38, %v724_v54  ;;  %v2300_v38 = vld [vmem:[%s3374_s3 + $0x78] sm:$0xff]  ;;  %v2307_v54 = vld [vmem:[%s3374_s3 + $0xb0] sm:$0xff] }
 0x123   : > { %1629 = vmatpush.bf16.msrb.mxu2 %v2300_v38  ;;  %1659 = vmatpush.bf16.msrb.mxu3 %v2307_v54 }
 0x124   : > { %v997_v0 = vadd.f32 %v2932_v22, %v985_v45  ;;  %v780_v45 = vpop.f32.mrf.mxu1 }
 0x125   : > { %v839_v1 = vpop.f32.mrf.mxu2  ;;  %v791_v7 = vadd.f32 %v780_v45, %v725_v5 }
 0x126   : > { %v905_v3 = vpop.f32.mrf.mxu3  ;;  %v1005_v47 = vmax.f32 %v997_v0, 0.0  ;;  %v855_v52 = vadd.f32 %v839_v1, %v788_v11 }
 0x127   : > { %v2956_v6 = vld [vmem:[#allocation3 + $0x11] sm:$0xff] }
 0x128   : > { %1036 = vst.msk [vmem:[#allocation3 + $0x21] sm:$0xff] %vm1012_vm4, %v1005_v47  ;;  %v2374_v48 = vpack.i.bf16 %v2956_v6, %v1051_v28  ;;  %v2967_v18 = vld [vmem:[#allocation3 + $0x10] sm:$0xff]  ;;  %v921_v20 = vadd.f32 %v905_v3, %v855_v52 }
 0x129   : > { %v969_v10 = vpop.f32.mrf.mxu0  ;;  %v2981_v33 = vld [vmem:[#allocation3 + $0x12] sm:$0xff] }
 0x12a   : > { %v986_v13 = vadd.f32 %v969_v10, %v920_v8  ;;  %2375 = vrot.lane.b32.xlu0 %v2374_v48, %s2563_s27 }
 0x12c   : > { %v998_v53 = vadd.f32 %v2932_v22, %v986_v13  ;;  %v782_v10 = vpop.f32.mrf.mxu1 }
 0x12d   : > { %v842_v14 = vpop.f32.mrf.mxu2  ;;  %v792_v63 = vadd.f32 %v782_v10, %v726_v62  ;;  %v2293_v10 = vld [vmem:[%s3374_s3 + $0x40] sm:$0xff] }
 0x12e   : > { %v1006_v16 = vmax.f32 %v998_v53, 0.0  ;;  %v908_v17 = vpop.f32.mrf.mxu3  ;;  %v856_v57 = vadd.f32 %v842_v14, %v789_v23 }
 0x12f   : > { %v2969_v4 = vld [vmem:[#allocation3 + $0x20] sm:$0xff] }
 0x130   : > { %1037 = vst.msk [vmem:[#allocation3 + $0x31] sm:$0xff] %vm1012_vm4, %v1006_v16  ;;  %v2394_v51 = vpack.i.bf16 %v2969_v4, %v2967_v18  ;;  %v2978_v31 = vld [vmem:[#allocation3 + $0x22] sm:$0xff]  ;;  %v922_v39 = vadd.f32 %v908_v17, %v856_v57 }
 0x131   : > { %v971_v21 = vpop.f32.mrf.mxu0  ;;  %v2983_v35 = vld [vmem:[#allocation3 + $0x21] sm:$0xff]  ;;  %v2399_v55 = vpack.i.bf16 %v2978_v31, %v2981_v33 }
 0x132   : > { %v987_v24 = vadd.f32 %v971_v21, %v921_v20  ;;  %2395 = vrot.lane.b32.xlu2 %v2394_v51, %s2563_s27 }
 0x134   : > { %v999_v25 = vadd.f32 %v2932_v22, %v987_v24 }
 0x135   : > { %v844_v26 = vpop.f32.mrf.mxu2 }
 0x136   : > { %v1007_v32 = vmax.f32 %v999_v25, 0.0  ;;  %v910_v61 = vpop.f32.mrf.mxu3  ;;  %v857_v27 = vadd.f32 %v844_v26, %v790_v42  ;;  %v2299_v25 = vld [vmem:[%s3374_s3 + $0x70] sm:$0xff]  ;;  %v2292_v26 = vld [vmem:[%s3374_s3 + $0x38] sm:$0xff]  ;;  %v2297_v42 = vld [vmem:[%s3374_s3 + $0x60] sm:$0xff] }
 0x137   : > { %v2985_v36 = vld [vmem:[#allocation3 + $0x31] sm:$0xff]  ;;  %1600 = vmatpush.bf16.msra.mxu1 %v2292_v26  ;;  %1630 = vmatpush.bf16.msrb.mxu2 %v2299_v25 }
 0x138   : > { %1038 = vst.msk [vmem:[#allocation3 + $0x41] sm:$0xff] %vm1012_vm4, %v1007_v32  ;;  %v2379_v40 = vpack.i.bf16 %v2985_v36, %v2983_v35  ;;  %v3001_v3 = vld [vmem:[#allocation3 + $0x32] sm:$0xff]  ;;  %v923_v49 = vadd.f32 %v910_v61, %v857_v27  ;;  %v2306_v61 = vld [vmem:[%s3374_s3 + $0xa8] sm:$0xff]  ;;  %v2305_v27 = vld [vmem:[%s3374_s3 + $0xa0] sm:$0xff] }
 0x139   : > { %v974_v41 = vpop.f32.mrf.mxu0  ;;  %1660 = vmatpush.bf16.msrb.mxu3 %v2306_v61 }
 0x13a   : > { %v988_v43 = vadd.f32 %v974_v41, %v922_v39  ;;  %2400 = vrot.lane.b32.xlu2 %v2399_v55, %s2563_s27  ;;  %2380 = vrot.lane.b32.xlu0 %v2379_v40, %s2563_s27  ;;  %v2290_v41 = vld [vmem:[%s3374_s3 + $0x28] sm:$0xff] }
 0x13c   : > { %v1000_v58 = vadd.f32 %v2932_v22, %v988_v43 }
 0x13d   : > { %v847_v1 = vpop.f32.mrf.mxu2  ;;  %1661 = vmatpush.bf16.msrb.mxu3 %v2305_v27 }
 0x13e   : > { %v1008_v0 = vmax.f32 %v1000_v58, 0.0  ;;  %v913_v29 = vpop.f32.mrf.mxu3  ;;  %v858_v2 = vadd.f32 %v847_v1, %v791_v7  ;;  %v3077_v58 = vld [vmem:[#allocation3 + $0x30] sm:$0xff] }
 0x13f   : > { %v3003_v28 = vld [vmem:[#allocation3 + $0x42] sm:$0xff] }
 0x140   : > { %1039 = vst.msk [vmem:[#allocation3 + $0x51] sm:$0xff] %vm1012_vm4, %v1008_v0  ;;  %v2414_v59 = vpack.i.bf16 %v3003_v28, %v3001_v3  ;;  %v3014_v11 = vld [vmem:[#allocation3 + $0x41] sm:$0xff]  ;;  %v924_v34 = vadd.f32 %v913_v29, %v858_v2 }
 0x141   : > { %v976_v47 = vpop.f32.mrf.mxu0  ;;  %v3072_v43 = vld [vmem:[#allocation3 + $0x40] sm:$0xff] }
 0x142   : > { %v989_v8 = vadd.f32 %v976_v47, %v923_v49  ;;  %2415 = vrot.lane.b32.xlu2 %v2414_v59, %s2563_s27  ;;  %2405 = vrot.lane.b32.xlu0 %v2379_v40, %s2563_s27  ;;  %v2298_v40 = vld [vmem:[%s3374_s3 + $0x68] sm:$0xff]  ;;  %v2409_v0 = vpack.i.bf16 %v3072_v43, %v3077_v58  ;;  %v2296_v49 = vld [vmem:[%s3374_s3 + $0x58] sm:$0xff] }
 0x143   : > { %1631 = vmatpush.bf16.msrb.mxu2 %v2298_v40  ;;  %v2304_v59 = vld [vmem:[%s3374_s3 + $0x98] sm:$0xff]  ;;  %v2295_v47 = vld [vmem:[%s3374_s3 + $0x50] sm:$0xff] }
 0x144   : > { %v1001_v48 = vadd.f32 %v2932_v22, %v989_v8  ;;  %1662 = vmatpush.bf16.msrb.mxu3 %v2304_v59 }
 0x145   : > { %v849_v53 = vpop.f32.mrf.mxu2 }
 0x146   : > { %v1009_v9 = vmax.f32 %v1001_v48, 0.0  ;;  %v859_v12 = vadd.f32 %v849_v53, %v792_v63  ;;  %v915_v16 = vpop.f32.mrf.mxu3  ;;  %v2302_v53 = vld [vmem:[%s3374_s3 + $0x88] sm:$0xff]  ;;  %v2301_v63 = vld [vmem:[%s3374_s3 + $0x80] sm:$0xff] }
 0x147   : > { %v3016_v13 = vld [vmem:[#allocation3 + $0x51] sm:$0xff]  ;;  %1632 = vmatpush.bf16.msrb.mxu2 %v2297_v42 }
 0x148   : > { %1040 = vst.msk [vmem:[#allocation3 + $0x61] sm:$0xff] %vm1012_vm4, %v1009_v9  ;;  %v2384_v52 = vpack.i.bf16 %v3016_v13, %v3014_v11  ;;  %v3024_v19 = vld [vmem:[#allocation3 + $0x52] sm:$0xff]  ;;  %v925_v51 = vadd.f32 %v915_v16, %v859_v12  ;;  %v2289_v9 = vld [vmem:[%s3374_s3 + $0x20] sm:$0xff] }
 0x149   : > { %v979_v14 = vpop.f32.mrf.mxu0  ;;  %v3104_v8 = vld [vmem:[#allocation3 + $0x50] sm:$0xff]  ;;  %v2316_v12 = vld [vmem:[%s3374_s3 + $0xf8] sm:$0xff] }
 0x14a   : > { %v990_v50 = vadd.f32 %v979_v14, %v924_v34  ;;  %2385 = vrot.lane.b32.xlu1 %v2384_v52, %s2563_s27  ;;  %2420 = vrot.lane.b32.xlu0 %v2384_v52, %s2563_s27  ;;  %v2303_v34 = vld [vmem:[%s3374_s3 + $0x90] sm:$0xff]  ;;  %v2288_v52 = vld [vmem:[%s3374_s3 + $0x18] sm:$0xff] }
 0x14b   : > { %1633 = vmatpush.bf16.msrb.mxu2 %v2296_v49  ;;  %1663 = vmatpush.bf16.msrb.mxu3 %v2303_v34  ;;  %v2287_v14 = vld [vmem:[%s3374_s3 + $0x10] sm:$0xff] }
 0x14c   : > { %v1002_v15 = vadd.f32 %v2932_v22, %v990_v50  ;;  %v2286_v50 = vld [vmem:[%s3374_s3 + $0x8] sm:$0xff]  ;;  %1687 = vmatpush.bf16.msrb.mxu0 %v2316_v12  ;;  %v2315_v16 = vld [vmem:[%s3374_s3 + $0xf0] sm:$0xff] }
 0x14e   : > { %v1010_v17 = vmax.f32 %v1002_v15, 0.0  ;;  %v2285_v15 = vld [vmem:[%s3374_s3] sm:$0xff] }
 0x14f   : > { %v3026_v20 = vld [vmem:[#allocation3 + $0x62] sm:$0xff]  ;;  %1634 = vmatpush.bf16.msrb.mxu2 %v2295_v47  ;;  %1664 = vmatpush.bf16.msrb.mxu3 %v2302_v53 }
 0x150   : > { %1041 = vst.msk [vmem:[#allocation3 + $0x71] sm:$0xff] %vm1012_vm4, %v1010_v17  ;;  %v2429_v21 = vpack.i.bf16 %v3026_v20, %v3024_v19  ;;  %v3048_v37 = vld [vmem:[#allocation3 + $0x61] sm:$0xff]  ;;  %1688 = vmatpush.bf16.msrb.mxu0 %v2315_v16 }
 0x151   : > { %v981_v23 = vpop.f32.mrf.mxu0  ;;  %v3102_v7 = vld [vmem:[#allocation3 + $0x60] sm:$0xff]  ;;  %v2314_v17 = vld [vmem:[%s3374_s3 + $0xe8] sm:$0xff] }
 0x152   : > { %v991_v24 = vadd.f32 %v981_v23, %v925_v51  ;;  %2430 = vrot.lane.b32.xlu2 %v2429_v21, %s2563_s27  ;;  %v2424_v29 = vpack.i.bf16 %v3102_v7, %v3104_v8  ;;  %v2313_v51 = vld [vmem:[%s3374_s3 + $0xe0] sm:$0xff]  ;;  %v2312_v21 = vld [vmem:[%s3374_s3 + $0xd8] sm:$0xff] }
 0x153   : > { %1635 = vmatpush.bf16.msrb.mxu2 %v2294_v30  ;;  %1665 = vmatpush.bf16.msrb.mxu3 %v2301_v63  ;;  %v1059_v23 = vld [vmem:[#allocation3 + $0x2] sm:$0xff] }
 0x154   : > { %v1003_v57 = vadd.f32 %v2932_v22, %v991_v24  ;;  %v2291_v22 = vld [vmem:[%s3374_s3 + $0x30] sm:$0xff]  ;;  %1689 = vmatpush.bf16.msrb.mxu0 %v2314_v17 }
 0x155   : > { %1601 = vmatpush.bf16.msra.mxu1 %v2291_v22 }
 0x156   : > { %v1011_v32 = vmax.f32 %v1003_v57, 0.0  ;;  %v2311_v57 = vld [vmem:[%s3374_s3 + $0xd0] sm:$0xff] }
 0x157   : > { %v3050_v39 = vld [vmem:[#allocation3 + $0x71] sm:$0xff]  ;;  %1636 = vmatpush.bf16.msrb.mxu2 %v2293_v10 }
 0x158   : > { %1042 = vst.msk [vmem:[#allocation3 + $0x81] sm:$0xff] %vm1012_vm4, %v1011_v32  ;;  %v2389_v55 = vpack.i.bf16 %v3050_v39, %v3048_v37  ;;  %v3079_v45 = vld [vmem:[#allocation3 + $0x72] sm:$0xff]  ;;  %1690 = vmatpush.bf16.msrb.mxu0 %v2313_v51  ;;  %v2310_v32 = vld [vmem:[%s3374_s3 + $0xc8] sm:$0xff] }
 0x159   : > { %1602 = vmatpush.bf16.msra.mxu1 %v2290_v41  ;;  %v3114_v48 = vld [vmem:[#allocation3 + $0x70] sm:$0xff] }
 0x15a   : > { %2390 = vrot.lane.b32.xlu1 %v2389_v55, %s2563_s27  ;;  %2435 = vrot.lane.b32.xlu0 %v2389_v55, %s2563_s27  ;;  %v2319_v51 = vld [vmem:[%s3374_s3 + $0x110] sm:$0xff] }
 0x15c   : > { %1691 = vmatpush.bf16.msrb.mxu0 %v2312_v21 }
 0x15d   : > { %1603 = vmatpush.bf16.msra.mxu1 %v2289_v9 }
 0x15f   : > { %v3081_v60 = vld [vmem:[#allocation3 + $0x82] sm:$0xff] }
 0x160   : > { %v3083_v5 = vld [vmem:[#allocation3 + $0x81] sm:$0xff]  ;;  %v2444_v1 = vpack.i.bf16 %v3081_v60, %v3079_v45  ;;  %1692 = vmatpush.bf16.msrb.mxu0 %v2311_v57 }
 0x161   : > { %v2449_v46 = vpack.i.bf16 %v1107_v44, %v3083_v5  ;;  %v3112_v2 = vld [vmem:[#allocation3 + $0x80] sm:$0xff]  ;;  %1604 = vmatpush.bf16.msra.mxu1 %v2288_v52 }
 0x162   : > { %2410 = vrot.lane.b32.xlu1 %v2409_v0, %s2563_s27  ;;  %2445 = vrot.lane.b32.xlu2 %v2444_v1, %s2563_s27  ;;  %v2439_v62 = vpack.i.bf16 %v3112_v2, %v3114_v48  ;;  %v1043_v44 = vld [vmem:[#allocation3] sm:$0xff] }
 0x163   : > { %2450 = vrot.lane.b32.xlu0 %v2449_v46, %s2563_s27 }
 0x164   : > { %1693 = vmatpush.bf16.msrb.mxu0 %v2310_v32 }
 0x165   : > { %1605 = vmatpush.bf16.msra.mxu1 %v2287_v14 }
 0x169   : > { %1606 = vmatpush.bf16.msra.mxu1 %v2286_v50 }
 0x16a   : > { %2425 = vrot.lane.b32.xlu1 %v2424_v29, %s2563_s27 }
 0x16d   : > { %1607 = vmatpush.bf16.msra.mxu1 %v2285_v15 }
 0x172   : > { %2440 = vrot.lane.b32.xlu1 %v2439_v62, %s2563_s27  ;;  %s1938_s27 = scalar_lea.sflag [#allocation6], %s3304_s30 }
 0x18c   : > { %v2396_v24 = vpop.permute.xlu2 %2395 }
 0x18d   : > { %v2398_v38 = vunpack.i.h.bf16 %v2396_v24  ;;  %v2397_v56 = vunpack.i.l.bf16 %v2396_v24 }
 0x18f   : > { %v1252_v25 = vsel %vm1012_vm4, %v1059_v23, %v2397_v56  ;;  %v1253_v26 = vsel %vm1012_vm4, %v2981_v33, %v2398_v38  ;;  %v2309_v33 = vld [vmem:[%s3374_s3 + $0xc0] sm:$0xff] }
 0x190   : > { %v1277_v54 = vpack.c.bf16 %v1253_v26, %v1252_v25  ;;  %1694 = vmatpush.bf16.msrb.mxu0 %v2309_v33 }
 0x192   : > { %1637 = vmatmul.bf16.vlgmr.msrb.gmra.mxu2 %v1277_v54 }
 0x194   : > { %v2401_v22 = vpop.permute.xlu2 %2400 }
 0x195   : > { %v2403_v55 = vunpack.i.h.bf16 %v2401_v22  ;;  %v2402_v40 = vunpack.i.l.bf16 %v2401_v22 }
 0x197   : > { %v1261_v61 = vsel %vm1012_vm4, %v2983_v35, %v2403_v55  ;;  %v1260_v41 = vsel %vm1012_vm4, %v2956_v6, %v2402_v40 }
 0x198   : > { %v1278_v42 = vpack.c.bf16 %v1261_v61, %v1260_v41 }
 0x19a   : > { %1666 = vmatmul.bf16.vlgmr.msrb.gmra.mxu3 %v1278_v42 }
 0x19c   : > { %v2376_v27 = vpop.permute.xlu0 %2375  ;;  %v2416_v46 = vpop.permute.xlu2 %2415 }
 0x19d   : > { %v2378_v0 = vunpack.i.h.bf16 %v2376_v27  ;;  %v2377_v1 = vunpack.i.l.bf16 %v2376_v27  ;;  %v2418_v47 = vunpack.i.h.bf16 %v2416_v46  ;;  %v2417_v6 = vunpack.i.l.bf16 %v2416_v46 }
 0x19f   : > { %v1244_v49 = vsel %vm1012_vm4, %v1043_v44, %v2377_v1  ;;  %v1245_v35 = vsel %vm1012_vm4, %v2967_v18, %v2378_v0  ;;  %v1262_v29 = vsel %vm1012_vm4, %v2985_v36, %v2417_v6  ;;  %v1263_v30 = vsel %vm1012_vm4, %v3014_v11, %v2418_v47  ;;  %v2320_v36 = vld [vmem:[%s3374_s3 + $0x118] sm:$0xff] }
 0x1a0   : > { %v1276_v59 = vpack.c.bf16 %v1245_v35, %v1244_v49  ;;  %v1283_v62 = vpack.c.bf16 %v1263_v30, %v1262_v29  ;;  %1720 = vmatpush.bf16.msrb.mxu1 %v2320_v36 }
 0x1a2   : > { %1608 = vmatmul.bf16.vlgmr.msra.gmra.mxu1 %v1276_v59 }
 0x1a4   : > { %1721 = vmatpush.bf16.msrb.mxu1 %v2319_v51  ;;  %v1285_v51 = vpack.c.bf16 %v3024_v19, %v3003_v28 }
 0x1aa   : > { %1671 = vmatmul.bf16.gmra.mxu3 %v1283_v62 }
 0x1ac   : > { %v2381_v9 = vpop.permute.xlu0 %2380  ;;  %v2431_v52 = vpop.permute.xlu2 %2430 }
 0x1ad   : > { %v2383_v10 = vunpack.i.h.bf16 %v2381_v9  ;;  %v2382_v34 = vunpack.i.l.bf16 %v2381_v9  ;;  %v2433_v63 = vunpack.i.h.bf16 %v2431_v52  ;;  %v2432_v50 = vunpack.i.l.bf16 %v2431_v52 }
 0x1af   : > { %v1246_v53 = vsel %vm1012_vm4, %v2969_v4, %v2382_v34  ;;  %v1247_v18 = vsel %vm1012_vm4, %v3077_v58, %v2383_v10  ;;  %v1264_v16 = vsel %vm1012_vm4, %v3016_v13, %v2432_v50  ;;  %v1265_v17 = vsel %vm1012_vm4, %v3048_v37, %v2433_v63  ;;  %v2318_v13 = vld [vmem:[%s3374_s3 + $0x108] sm:$0xff] }
 0x1b0   : > { %v1281_v14 = vpack.c.bf16 %v1247_v18, %v1246_v53  ;;  %v1288_v38 = vpack.c.bf16 %v1265_v17, %v1264_v16  ;;  %1722 = vmatpush.bf16.msrb.mxu1 %v2318_v13  ;;  %v1290_v13 = vpack.c.bf16 %v3079_v45, %v3026_v20 }
 0x1b2   : > { %1613 = vmatmul.bf16.gmra.mxu1 %v1281_v14  ;;  %v1280_v14 = vpack.c.bf16 %v3001_v3, %v2978_v31 }
 0x1b4   : > { %v2406_v11 = vpop.permute.xlu0 %2405 }
 0x1b5   : > { %v2408_v12 = vunpack.i.h.bf16 %v2406_v11  ;;  %v2407_v15 = vunpack.i.l.bf16 %v2406_v11 }
 0x1b7   : > { %v1269_v21 = vsel %vm1012_vm4, %v3077_v58, %v2408_v12  ;;  %v1268_v23 = vsel %vm1012_vm4, %v2969_v4, %v2407_v15  ;;  %v2317_v58 = vld [vmem:[%s3374_s3 + $0x100] sm:$0xff] }
 0x1b8   : > { %v1279_v24 = vpack.c.bf16 %v1269_v21, %v1268_v23  ;;  %1723 = vmatpush.bf16.msrb.mxu1 %v2317_v58 }
 0x1ba   : > { %1676 = vmatmul.bf16.gmra.mxu3 %v1288_v38  ;;  %1695 = vmatmul.bf16.vlgmr.msrb.gmra.mxu0 %v1279_v24 }
 0x1bc   : > { %v2386_v37 = vpop.permute.xlu1 %2385  ;;  %v2446_v25 = vpop.permute.xlu2 %2445 }
 0x1bd   : > { %v2388_v56 = vunpack.i.h.bf16 %v2386_v37  ;;  %v2387_v57 = vunpack.i.l.bf16 %v2386_v37  ;;  %v2421_v26 = vpop.permute.xlu0 %2420  ;;  %v2448_v22 = vunpack.i.h.bf16 %v2446_v25  ;;  %v2447_v55 = vunpack.i.l.bf16 %v2446_v25  ;;  %v1115_v37 = vld [vmem:[#allocation3 + $0x92] sm:$0xff] }
 0x1be   : > { %v2423_v40 = vunpack.i.h.bf16 %v2421_v26  ;;  %v2422_v61 = vunpack.i.l.bf16 %v2421_v26 }
 0x1bf   : > { %v1248_v4 = vsel %vm1012_vm4, %v3072_v43, %v2387_v57  ;;  %v1249_v54 = vsel %vm1012_vm4, %v3104_v8, %v2388_v56  ;;  %v1266_v41 = vsel %vm1012_vm4, %v3050_v39, %v2447_v55  ;;  %v1267_v42 = vsel %vm1012_vm4, %v3083_v5, %v2448_v22 }
 0x1c0   : > { %v1286_v32 = vpack.c.bf16 %v1249_v54, %v1248_v4  ;;  %v1270_v33 = vsel %vm1012_vm4, %v3072_v43, %v2422_v61  ;;  %v1271_v44 = vsel %vm1012_vm4, %v3104_v8, %v2423_v40  ;;  %v1293_v27 = vpack.c.bf16 %v1267_v42, %v1266_v41 }
 0x1c1   : > { %v1284_v0 = vpack.c.bf16 %v1271_v44, %v1270_v33 }
 0x1c2   : > { %1618 = vmatmul.bf16.gmra.mxu1 %v1286_v32 }
 0x1ca   : > { %1681 = vmatmul.bf16.gmra.mxu3 %v1293_v27  ;;  %1700 = vmatmul.bf16.gmra.mxu0 %v1284_v0 }
 0x1cc   : > { %v2391_v1 = vpop.permute.xlu1 %2390  ;;  %v2436_v35 = vpop.permute.xlu0 %2435 }
 0x1cd   : > { %v2393_v46 = vunpack.i.h.bf16 %v2391_v1  ;;  %v2392_v49 = vunpack.i.l.bf16 %v2391_v1  ;;  %v2438_v47 = vunpack.i.h.bf16 %v2436_v35  ;;  %v2437_v43 = vunpack.i.l.bf16 %v2436_v35  ;;  %v3268_v35 = vld [vmem:[%s3376_s5] ss:$0 sm:$0xff] }
 0x1cf   : > { %v1250_v39 = vsel %vm1012_vm4, %v3102_v7, %v2392_v49  ;;  %v1251_v5 = vsel %vm1012_vm4, %v3114_v48, %v2393_v46  ;;  %v1272_v30 = vsel %vm1012_vm4, %v3102_v7, %v2437_v43  ;;  %v1273_v62 = vsel %vm1012_vm4, %v3114_v48, %v2438_v47  ;;  %v1099_v48 = vld [vmem:[#allocation3 + $0x90] sm:$0xff] }
 0x1d0   : > { %v1291_v59 = vpack.c.bf16 %v1251_v5, %v1250_v39  ;;  %v1289_v52 = vpack.c.bf16 %v1273_v62, %v1272_v30 }
 0x1d2   : > { %1623 = vmatmul.bf16.gmra.mxu1 %v1291_v59 }
 0x1d4   : > { %v2411_v6 = vpop.permute.xlu1 %2410 }
 0x1d5   : > { %v2413_v8 = vunpack.i.h.bf16 %v2411_v6  ;;  %v2412_v29 = vunpack.i.l.bf16 %v2411_v6  ;;  %v2451_v53 = vpop.permute.xlu0 %2450 }
 0x1d6   : > { %v2453_v63 = vunpack.i.h.bf16 %v2451_v53  ;;  %v2452_v7 = vunpack.i.l.bf16 %v2451_v53 }
 0x1d7   : > { %v1254_v9 = vsel %vm1012_vm4, %v2978_v31, %v2412_v29  ;;  %v1255_v10 = vsel %vm1012_vm4, %v3001_v3, %v2413_v8 }
 0x1d8   : > { %v1282_v34 = vpack.c.bf16 %v1255_v10, %v1254_v9  ;;  %v1274_v15 = vsel %vm1012_vm4, %v3112_v2, %v2452_v7  ;;  %v1275_v16 = vsel %vm1012_vm4, %v1099_v48, %v2453_v63 }
 0x1d9   : > { %v1294_v31 = vpack.c.bf16 %v1275_v16, %v1274_v15 }
 0x1da   : > { %1642 = vmatmul.bf16.gmra.mxu2 %v1282_v34  ;;  %1705 = vmatmul.bf16.gmra.mxu0 %v1289_v52 }
 0x1dc   : > { %v2426_v18 = vpop.permute.xlu1 %2425 }
 0x1dd   : > { %v2428_v50 = vunpack.i.h.bf16 %v2426_v18  ;;  %v2427_v36 = vunpack.i.l.bf16 %v2426_v18 }
 0x1df   : > { %v1256_v11 = vsel %vm1012_vm4, %v3003_v28, %v2427_v36  ;;  %v1257_v12 = vsel %vm1012_vm4, %v3024_v19, %v2428_v50  ;;  %v1295_v28 = vpack.c.bf16 %v1115_v37, %v3081_v60 }
 0x1e0   : > { %v1287_v17 = vpack.c.bf16 %v1257_v12, %v1256_v11 }
 0x1e2   : > { %2266 = vmatmul.msk.bf16.vlgmr.msrb.gmra.mxu1 %vm1012_vm4, %v1280_v14 }
 0x1e4   : > { %v2441_v3 = vpop.permute.xlu1 %2440 }
 0x1e5   : > { %v2443_v21 = vunpack.i.h.bf16 %v2441_v3  ;;  %v2442_v23 = vunpack.i.l.bf16 %v2441_v3 }
 0x1e7   : > { %v1258_v24 = vsel %vm1012_vm4, %v3026_v20, %v2442_v23  ;;  %v1259_v2 = vsel %vm1012_vm4, %v3079_v45, %v2443_v21  ;;  %v3259_v20 = vld [vmem:[%s3375_s4] ss:$0 sm:$0xff] }
 0x1e8   : > { %v1292_v38 = vpack.c.bf16 %v1259_v2, %v1258_v24 }
 0x1ea   : > { %1647 = vmatmul.bf16.gmra.mxu2 %v1287_v17  ;;  %1710 = vmatmul.bf16.gmra.mxu0 %v1294_v31 }
 0x1f2   : > { %2267 = vmatmul.msk.bf16.gmra.mxu1 %vm1012_vm4, %v1285_v51 }
 0x1fa   : > { %1652 = vmatmul.bf16.gmra.mxu2 %v1292_v38 }
 0x202   : > { %2268 = vmatmul.msk.bf16.gmra.mxu1 %vm1012_vm4, %v1290_v13 }
 0x212   : > { %2269 = vmatmul.msk.bf16.gmra.mxu1 %vm1012_vm4, %v1295_v28 }
 0x215   : > { %v1638_v4 = vpop.f32.mrf.mxu2 }
 0x21d   : > { %v1667_v54 = vpop.f32.mrf.mxu3  ;;  %v1640_v60 = vpop.f32.mrf.mxu2 }
 0x21f   : > { %v1609_v19 = vpop.f32.mrf.mxu1 }
 0x220   : > { %v1610_v45 = vadd.f32 %v3259_v20, %v1609_v19 }
 0x222   : > { %v1639_v61 = vadd.f32 %v1638_v4, %v1610_v45 }
 0x224   : > { %v1668_v33 = vadd.f32 %v1667_v54, %v1639_v61 }
 0x225   : > { %v1669_v55 = vpop.f32.mrf.mxu3 }
 0x227   : > { %v1611_v56 = vpop.f32.mrf.mxu1 }
 0x228   : > { %v1612_v42 = vadd.f32 %v3259_v20, %v1611_v56 }
 0x22a   : > { %v1641_v46 = vadd.f32 %v1640_v60, %v1612_v42 }
 0x22c   : > { %v1670_v47 = vadd.f32 %v1669_v55, %v1641_v46 }
 0x22d   : > { %v1672_v0 = vpop.f32.mrf.mxu3 }
 0x22f   : > { %v1614_v57 = vpop.f32.mrf.mxu1 }
 0x230   : > { %v1615_v59 = vadd.f32 %v3259_v20, %v1614_v57 }
 0x235   : > { %v1674_v10 = vpop.f32.mrf.mxu3 }
 0x237   : > { %v1616_v58 = vpop.f32.mrf.mxu1  ;;  %v1696_v32 = vpop.f32.mrf.mxu0 }
 0x238   : > { %v1697_v27 = vadd.f32 %v1696_v32, %v1668_v33  ;;  %v1617_v53 = vadd.f32 %v3259_v20, %v1616_v58 }
 0x23d   : > { %v1677_v16 = vpop.f32.mrf.mxu3 }
 0x23f   : > { %v1619_v25 = vpop.f32.mrf.mxu1  ;;  %v1698_v41 = vpop.f32.mrf.mxu0 }
 0x240   : > { %v1699_v8 = vadd.f32 %v1698_v41, %v1670_v47  ;;  %v1620_v17 = vadd.f32 %v3259_v20, %v1619_v25 }
 0x245   : > { %v1679_v56 = vpop.f32.mrf.mxu3 }
 0x247   : > { %v1621_v26 = vpop.f32.mrf.mxu1  ;;  %v1701_v39 = vpop.f32.mrf.mxu0 }
 0x248   : > { %v1622_v28 = vadd.f32 %v3259_v20, %v1621_v26 }
 0x24f   : > { %v3254_v22 = vpop.f32.mrf.mxu1  ;;  %v1703_v18 = vpop.f32.mrf.mxu0 }
 0x250   : > { %v1625_v61 = vadd.f32 %v3259_v20, %v3254_v22 }
 0x257   : > { %v3262_v40 = vpop.f32.mrf.mxu1  ;;  %v1706_v3 = vpop.f32.mrf.mxu0 }
 0x25d   : > { %v1643_v44 = vpop.f32.mrf.mxu2 }
 0x25e   : > { %v1644_v29 = vadd.f32 %v1643_v44, %v1615_v59  ;;  %v1682_v44 = vpop.f32.mrf.mxu3 }
 0x25f   : > { %v1725_v1 = vpop.f32.mrf.mxu1  ;;  %v1708_v32 = vpop.f32.mrf.mxu0 }
 0x260   : > { %v1726_v49 = vadd.f32 %v1725_v1, %v1697_v27  ;;  %v1673_v34 = vadd.f32 %v1672_v0, %v1644_v29 }
 0x262   : > { %v1745_v5 = vmax.f32 %v1726_v49, 0.0  ;;  %v1702_v50 = vadd.f32 %v1701_v39, %v1673_v34 }
 0x264   : > { %v1760_v43 = vmul.f32 %v3268_v35, %v1745_v5  ;;  %v1627_v5 = vadd.f32 %v3259_v20, %v3262_v40 }
 0x265   : > { %v1645_v6 = vpop.f32.mrf.mxu2 }
 0x266   : > { %v1768_v30 = vsel %vm1012_vm4, %v1760_v43, 0.0  ;;  %v1646_v7 = vadd.f32 %v1645_v6, %v1617_v53  ;;  %v1684_v29 = vpop.f32.mrf.mxu3 }
 0x267   : > { %v1727_v62 = vpop.f32.mrf.mxu1  ;;  %1769 = vadd.xlane.f32.xlu1 %v1768_v30  ;;  %v1711_v49 = vpop.f32.mrf.mxu0 }
 0x268   : > { %v1728_v9 = vadd.f32 %v1727_v62, %v1699_v8  ;;  %v1675_v12 = vadd.f32 %v1674_v10, %v1646_v7 }
 0x26a   : > { %v1746_v52 = vmax.f32 %v1728_v9, 0.0  ;;  %v1704_v21 = vadd.f32 %v1703_v18, %v1675_v12  ;;  %v1793_v12 = vstv %s1792_s19 }
 0x26c   : > { %v1761_v14 = vmul.f32 %v3268_v35, %v1746_v52 }
 0x26d   : > { %v1648_v63 = vpop.f32.mrf.mxu2 }
 0x26e   : > { %v1771_v36 = vsel %vm1012_vm4, %v1761_v14, 0.0  ;;  %v1649_v51 = vadd.f32 %v1648_v63, %v1620_v17 }
 0x26f   : > { %v1730_v48 = vpop.f32.mrf.mxu1  ;;  %1772 = vadd.xlane.f32.xlu2 %v1771_v36  ;;  %v1713_v10 = vpop.f32.mrf.mxu0 }
 0x270   : > { %v1731_v11 = vadd.f32 %v1730_v48, %v1702_v50  ;;  %v1678_v13 = vadd.f32 %v1677_v16, %v1649_v51  ;;  %v1755_v50 = vld [vmem:[%s3379_s8] sm:$0xff] }
 0x271   : > { %1886 = vmatpush.msra.mxu3 %v1755_v50 }
 0x272   : > { %v1747_v15 = vmax.f32 %v1731_v11, 0.0  ;;  %v1707_v58 = vadd.f32 %v1706_v3, %v1678_v13  ;;  %v1810_v11 = vlaneseq }
 0x274   : > { %v1762_v31 = vmul.f32 %v3268_v35, %v1747_v15 }
 0x275   : > { %v1650_v24 = vpop.f32.mrf.mxu2 }
 0x276   : > { %v1774_v23 = vsel %vm1012_vm4, %v1762_v31, 0.0  ;;  %v1651_v57 = vadd.f32 %v1650_v24, %v1622_v28 }
 0x277   : > { %v1732_v2 = vpop.f32.mrf.mxu1  ;;  %1775 = vadd.xlane.f32.xlu0 %v1774_v23 }
 0x278   : > { %v1733_v38 = vadd.f32 %v1732_v2, %v1704_v21  ;;  %v1680_v60 = vadd.f32 %v1679_v56, %v1651_v57 }
 0x27a   : > { %v1748_v37 = vmax.f32 %v1733_v38, 0.0  ;;  %v1709_v42 = vadd.f32 %v1708_v32, %v1680_v60 }
 0x27c   : > { %v1763_v19 = vmul.f32 %v3268_v35, %v1748_v37 }
 0x27d   : > { %v1653_v45 = vpop.f32.mrf.mxu2 }
 0x27e   : > { %v1777_v25 = vsel %vm1012_vm4, %v1763_v19, 0.0  ;;  %v1654_v26 = vadd.f32 %v1653_v45, %v1625_v61 }
 0x27f   : > { %v1735_v4 = vpop.f32.mrf.mxu1  ;;  %1778 = vadd.xlane.f32.xlu2 %v1777_v25 }
 0x280   : > { %v1736_v54 = vadd.f32 %v1735_v4, %v1707_v58  ;;  %v1683_v1 = vadd.f32 %v1682_v44, %v1654_v26 }
 0x282   : > { %v1749_v55 = vmax.f32 %v1736_v54, 0.0  ;;  %v1712_v47 = vadd.f32 %v1711_v49, %v1683_v1 }
 0x284   : > { %v1764_v41 = vmul.f32 %v3268_v35, %v1749_v55 }
 0x285   : > { %v1655_v39 = vpop.f32.mrf.mxu2 }
 0x286   : > { %v1780_v33 = vsel %vm1012_vm4, %v1764_v41, 0.0  ;;  %v1656_v22 = vadd.f32 %v1655_v39, %v1627_v5  ;;  %v1753_v41 = vld [vmem:[%s3378_s7] sm:$0xff] }
 0x287   : > { %v1737_v27 = vpop.f32.mrf.mxu1  ;;  %1781 = vadd.xlane.f32.xlu1 %v1780_v33 }
 0x288   : > { %v1738_v0 = vadd.f32 %v1737_v27, %v1709_v42  ;;  %v1685_v30 = vadd.f32 %v1684_v29, %v1656_v22  ;;  %v1754_v42 = vld [vmem:[%s3378_s7 + $0x8] sm:$0xff] }
 0x28a   : > { %v1750_v46 = vmax.f32 %v1738_v0, 0.0  ;;  %v1714_v34 = vadd.f32 %v1713_v10, %v1685_v30 }
 0x28c   : > { %v1765_v59 = vmul.f32 %v3268_v35, %v1750_v46 }
 0x28e   : > { %v1783_v43 = vsel %vm1012_vm4, %v1765_v59, 0.0 }
 0x28f   : > { %v1740_v6 = vpop.f32.mrf.mxu1  ;;  %1784 = vadd.xlane.f32.xlu2 %v1783_v43 }
 0x290   : > { %v1741_v8 = vadd.f32 %v1740_v6, %v1712_v47 }
 0x292   : > { %v1751_v62 = vmax.f32 %v1741_v8, 0.0 }
 0x294   : > { %v1766_v9 = vmul.f32 %v3268_v35, %v1751_v62 }
 0x296   : > { %v1786_v52 = vsel %vm1012_vm4, %v1766_v9, 0.0 }
 0x297   : > { %v1742_v53 = vpop.f32.mrf.mxu1  ;;  %1787 = vadd.xlane.f32.xlu0 %v1786_v52 }
 0x298   : > { %v1743_v20 = vadd.f32 %v1742_v53, %v1714_v34 }
 0x29a   : > { %v1752_v40 = vmax.f32 %v1743_v20, 0.0 }
 0x29c   : > { %v1767_v18 = vmul.f32 %v3268_v35, %v1752_v40  ;;  %v1811_v35 = vand.u32 127, %v1810_v11 }
 0x29e   : > { %v1789_v14 = vsel %vm1012_vm4, %v1767_v18, 0.0 }
 0x29f   : > { %1790 = vadd.xlane.f32.xlu1 %v1789_v14 }
 0x2da   : > { %v1770_v7 = vpop.xlane.xlu1 %1769 }
 0x2db   : > { %v1794_v3 = vadd.f32 %v1793_v12, %v1770_v7 }
 0x2dd   : > { %v1812_v37 = vperm.slane %v1794_v3, %v1811_v35 }
 0x2e2   : > { %v1773_v63 = vpop.xlane.xlu2 %1772 }
 0x2e3   : > { %v1795_v15 = vadd.f32 %v1793_v12, %v1773_v63 }
 0x2e5   : > { %v1813_v24 = vperm.slane %v1795_v15, %v1811_v35 }
 0x2e7   : > { %v1821_v56 = vsel %vm1820_vm6, %v1813_v24, %v1812_v37 }
 0x2ea   : > { %v1776_v48 = vpop.xlane.xlu0 %1775 }
 0x2eb   : > { %v1796_v17 = vadd.f32 %v1793_v12, %v1776_v48 }
 0x2ed   : > { %v1814_v38 = vperm.slane %v1796_v17, %v1811_v35 }
 0x2ef   : > { %v1823_v58 = vsel %vm1822_vm7, %v1814_v38, %v1821_v56 }
 0x2f2   : > { %v1779_v36 = vpop.xlane.xlu2 %1778 }
 0x2f3   : > { %v1797_v51 = vadd.f32 %v1793_v12, %v1779_v36 }
 0x2f5   : > { %v1815_v28 = vperm.slane %v1797_v51, %v1811_v35 }
 0x2f7   : > { %v1825_v54 = vsel %vm1824_vm8, %v1815_v28, %v1823_v58 }
 0x2fa   : > { %v1782_v16 = vpop.xlane.xlu1 %1781 }
 0x2fb   : > { %v1798_v23 = vadd.f32 %v1793_v12, %v1782_v16 }
 0x2fd   : > { %v1816_v19 = vperm.slane %v1798_v23, %v1811_v35 }
 0x2ff   : > { %v1827_v45 = vsel %vm1826_vm9, %v1816_v19, %v1825_v54 }
 0x302   : > { %v1785_v31 = vpop.xlane.xlu2 %1784 }
 0x303   : > { %v1799_v2 = vadd.f32 %v1793_v12, %v1785_v31 }
 0x305   : > { %v1817_v57 = vperm.slane %v1799_v2, %v1811_v35 }
 0x307   : > { %v1829_v60 = vsel %vm1828_vm10, %v1817_v57, %v1827_v45 }
 0x30a   : > { %v1788_v21 = vpop.xlane.xlu0 %1787 }
 0x30b   : > { %v1800_v13 = vadd.f32 %v1793_v12, %v1788_v21 }
 0x30d   : > { %v1818_v25 = vperm.slane %v1800_v13, %v1811_v35 }
 0x30f   : > { %v1831_v61 = vsel %vm1830_vm11, %v1818_v25, %v1829_v60 }
 0x312   : > { %v1791_v4 = vpop.xlane.xlu1 %1790 }
 0x313   : > { %v1801_v32 = vadd.f32 %v1793_v12, %v1791_v4 }
 0x315   : > { %v1819_v55 = vperm.slane %v1801_v32, %v1811_v35 }
 0x317   : > { %v1833_v26 = vsel %vm1832_vm12, %v1819_v55, %v1831_v61 }
 0x318   : > { %1857 = vmatpush.msra.mxu2 %v1833_v26 }
 0x319   : > { %2270 = vmatmul.msk.f32.vlgmr.msra.gmra.mxu2 %vm1835_vm13, %v1753_v41 }
 0x321   : > { %2271 = vmatmul.msk.f32.gmra.mxu2 %vm1835_vm13, %v1754_v42 }
 0x39c   : > { %v1859_v33 = vpop.f32.mrf.mxu2 }
 0x39d   : > { %2272 = vmatmul.msk.f32.vlgmr.msra.gmra.mxu3 %vm1835_vm13, %v1859_v33 }
 0x3a4   : > { %v1862_v44 = vpop.f32.mrf.mxu2 }
 0x3a5   : > { %2273 = vmatmul.msk.f32.gmra.mxu3 %vm1835_vm13, %v1862_v44 }
 0x420   : > { %v1888_v27 = vpop.f32.mrf.mxu3 }
 0x421   : > { %1895 = vst.msk [vmem:[%s357_s13] sm:$0xff] %vm1894_vm14, %v1888_v27  ;;  %v2274_v0 = vmul.f32 -1.442695, %v1888_v27 }
 0x423   : > { %2457 = vpow2.f32 %v2274_v0 }
 0x428   : > { %v1891_v1 = vpop.f32.mrf.mxu3 }
 0x429   : > { %v2458_v46 = vpop.eup %2457  ;;  %1896 = vst.msk [vmem:[%s357_s13 + $0x8] sm:$0xff] %vm1894_vm14, %v1891_v1  ;;  %v2275_v49 = vmul.f32 -1.442695, %v1891_v1 }
 0x42a   : > { %v1903_v39 = vadd.f32 1.0, %v2458_v46 }
 0x42b   : > { %2492 = shalt.err (!%p2489_p3)
}
 0x42c   : > { %s2564_s13 = smov 128   ;;  %s2565_s0 = smov 8   ;;  %2459 = vpow2.f32 %v2275_v49  ;;  %v1916_v6 = vand.u32 2147483648, %v1903_v39  ;;  %v1914_v29 = vand.u32 2147483647, %v1903_v39  ;;  %vm1910_vm0 = vweird.f32 %v1903_v39 }
 0x42d   : > { %2325 = dma.vmem_to_hbm [thread:$0]  (%p2662_p5), %s1956_s22, 256, %s1958_s26, %s1938_s27, %s2564_s13, %s2564_s13, %s2565_s0   ;;  %2461 = vrcp.f32 %v1903_v39 }
 0x42e   : > { %v1917_v9 = vor.u32 1.1754944e-38, %v1916_v6  ;;  %vm1915_vm2 = vcmp.eq.f32.partialorder %v1914_v29, 8.507059e+37  ;;  %s3388_s11 = sshll.u32 %s3304_s30, 4  ;;  %s3389_s22 = sshll.u32 %s2645_s6, 4 }
 0x42f   : > { %s364_s12 = scalar_lea.vmem [#allocation7], %s3388_s11  ;;  %s1971_s28 = scalar_lea.hbm %s3381_s10, %s3389_s22 }
 0x430   : > { %s1972_s29 = sshll.u32 %s364_s12, 4  ;;  %s1974_s14 = sshll.u32 %s1971_s28, 4  ;;  %s1973_s29 = int_to_ptr.vmem [resolvable:$true] %s1972_s29  ;;  %s1975_s14 = int_to_ptr.hbm [resolvable:$true] %s1974_s14 }
 0x431   : > { %s1943_s6 = scalar_lea.sflag [#allocation8], %s3304_s30  ;;  %s2507_s19 = sshra.s32 %s1975_s14, 4  ;;  %s2508_s19 = int_to_ptr.hbm [resolvable:$true] %s2507_s19 }
 0x432   : > { %v2460_v5 = vpop.eup %2459  ;;  %s2509_s21 = scalar_lea.hbm %s2508_s19, 16  ;;  %s2513_s26 = scalar_lea.hbm %s3381_s10, 32 }
 0x433   : > { %v2462_v59 = vpop.eup %2461  ;;  %v1904_v22 = vadd.f32 1.0, %v2460_v5  ;;  %p2510_p4 = scmp.ne.s32.totalorder %s2508_s19, %s2509_s21  ;;  %p2514_p9 = scmp.lt.s32.totalorder %s2508_s19, %s3381_s10 }
 0x434   : > { %v1906_v47 = vmul.f32 %v2462_v59, %v1903_v39  ;;  %vm1911_vm15 = vweird.f32 %v2462_v59  ;;  %p2515_p10 = scmp.lt.s32.totalorder %s2513_s26, %s2509_s21 }
 0x435   : > { %2463 = vrcp.f32 %v1904_v22  ;;  %vm1912_vm1 = vmor %vm1910_vm0, %vm1911_vm15  ;;  %v1931_v20 = vand.u32 2147483648, %v1904_v22  ;;  %v1929_v18 = vand.u32 2147483647, %v1904_v22  ;;  %vm1925_vm4 = vweird.f32 %v1904_v22  ;;  %p2511_p7 = pnand %p2510_p4, %p2662_p5 }
 0x436   : > { %v1907_v43 = vsub.f32 1.0, %v1906_v47  ;;  %p2516_p11 = por %p2515_p10, %p2514_p9 }
 0x437   : > { %v1932_v63 = vor.u32 1.1754944e-38, %v1931_v20  ;;  %vm1930_vm6 = vcmp.eq.f32.partialorder %v1929_v18, 8.507059e+37  ;;  %p2512_p8 = pneg %p2511_p7 }
 0x438   : > { %v1908_v8 = vmul.f32 %v2462_v59, %v1907_v43 }
 0x439   : > { %p2517_p12 = pnand %p2516_p11, %p2512_p8 }
 0x43a   : > { %v1909_v30 = vadd.f32 %v2462_v59, %v1908_v8 }
 0x43b   : > { %v2464_v62 = vpop.eup %2463 }
 0x43c   : > { %v1913_v10 = vsel %vm1912_vm1, %v2462_v59, %v1909_v30  ;;  %v1921_v34 = vmul.f32 %v2464_v62, %v1904_v22  ;;  %vm1926_vm3 = vweird.f32 %v2464_v62 }
 0x43d   : > { %v1918_v52 = vsel %vm1915_vm2, %v1917_v9, %v1913_v10  ;;  %vm1927_vm5 = vmor %vm1925_vm4, %vm1926_vm3 }
 0x43e   : > { %1935 = vst.msk [vmem:[%s364_s12] sm:$0xff] %vm1894_vm14, %v1918_v52  ;;  %v1922_v53 = vsub.f32 1.0, %v1921_v34 }
 0x440   : > { %v1923_v40 = vmul.f32 %v2464_v62, %v1922_v53 }
 0x442   : > { %v1924_v14 = vadd.f32 %v2464_v62, %v1923_v40 }
 0x444   : > { %v1928_v7 = vsel %vm1927_vm5, %v2464_v62, %v1924_v14 }
 0x445   : > { %v1933_v50 = vsel %vm1930_vm6, %v1932_v63, %v1928_v7 }
 0x446   : > { %1936 = vst.msk [vmem:[%s364_s12 + $0x8] sm:$0xff] %vm1894_vm14, %v1933_v50 }
 0x447   : > { %2520 = shalt.err (!%p2517_p12)
}
 0x448   : > { %2326 = dma.vmem_to_hbm [thread:$0]  (%p2662_p5), %s1973_s29, 256, %s1975_s14, %s1943_s6, %s2564_s13, %s2564_s13, %s2565_s0  }
 0x449 PF: > { %p2336_p13 = scmp.ge.s32.totalorder %s2559_s18, 2  ;;  %s1989_s30 = sand.u32 1, %s2547_s15  }
 0x44a   : > { %s1990_s12 = scalar_lea.sflag [#allocation6], %s1989_s30 }
 0x44b   : > { %p2330_p0 = pnand %p2336_p13, %p2666_p6 }
 0x44d   : > { %p2331_p1 = pneg %p2330_p0 }
 0x44f   : > { %2538 = dma.done.wait (%p2331_p1), %s1990_s12, 256  }
 0x450   : > { %2540 = vsyncadd (%p2331_p1), %s1990_s12, 4294967040  ;;  %s2000_s19 = scalar_lea.sflag [#allocation8], %s1989_s30 }
 0x451   : > { %2542 = dma.done.wait (%p2331_p1), %s2000_s19, 256  }
 0x452   : > { %2544 = vsyncadd (%p2331_p1), %s2000_s19, 4294967040  ;;  %p25_p5 = scmp.ge.s32.totalorder %s2649_s20, 4   ;;  %s3390_s15 = smov %s2551_s16 }
 0x453   : > { %s3391_s16 = smov %s2555_s17  ;;  %s3392_s17 = smov %s2660_s23 }
 0x454   : > { %s3393_s18 = smov %s2649_s20  ;;  %27 = sbr.rel (!%p25_p5) target bundleno = 8 (0x8), region = 120 }
 0x459   :  { %2006 = vsyncpa [#allocation6], 1 }
 0x45a   :  { %2008 = vsyncpa [#allocation6 + $0x1], 1 }
 0x45b   :  { %2009 = vsyncpa [#allocation8], 1 }
 0x45c   :  { %2011 = vsyncpa [#allocation8 + $0x1], 1 }

</bundles_post_ra>
